<compile_context>
chip_gen: v7x
topology: tpu7x:2x2x1
jax: 0.10.0
libtpu: 0.0.40
codegen_flags: <defaults>
</compile_context>

<pallas_src>
import jax
import jax.numpy as jnp
from jax.experimental import pallas as pl
from jax.experimental.pallas import tpu as pltpu

LANE = 128      # lane width (last-dim granularity)
SUBLANE = 8     # f32 sublane granularity (second-to-last dim)
NEG_INF = -1e30


def _round_up(x, m):
    return (x + m - 1) // m * m


# ------------------------------ fused kernel --------------------------------

def _decoder_step_kernel(tok_ref,      # (Bp,)           int32, SMEM (scalar prefetch)
                         emb_ref,      # (V, Dp)         f32, HBM (pl.ANY)
                         hid_ref,      # (L, Bp, Hp)     f32, VMEM
                         wi_ref,       # (L, Dp, 3*Hp)   bf16, VMEM (input-side GRU weights)
                         wh_ref,       # (L, Hp, 3*Hp)   bf16, VMEM (hidden-side GRU weights)
                         bi_ref,       # (L, 1, 3*Hp)    f32, VMEM
                         bh_ref,       # (L, 1, 3*Hp)    f32, VMEM
                         fcw_ref,      # (Hp, TILE_V)    bf16, VMEM (streamed vocab tile)
                         fcb_ref,      # (1, TILE_V)     f32, VMEM (-1e30 in padded cols)
                         logits_ref,   # (Bp, TILE_V)    f32, VMEM out (raw logits tile)
                         hnew_ref,     # (L, Bp, Hp)     f32, VMEM out
                         lse_ref,      # (Bp, 1)         f32, VMEM out (written on last tile)
                         x_buf,        # (Bp, Dp)        f32 scratch (gathered embeddings)
                         hlast_sc,     # (Bp, Hp)        f32 scratch (top-layer hidden)
                         m_sc,         # (Bp, 1)         f32 scratch (running max)
                         l_sc,         # (Bp, 1)         f32 scratch (running sum)
                         sem):         # (Bp,)           DMA semaphores
    j = pl.program_id(0)
    L, Bp, Hp = hid_ref.shape

    # ---------- phase A (grid step 0 only): embedding gather + GRU stack -----
    @pl.when(j == 0)
    def _gru_phase():
        # 1) issue one small row-DMA per batch element (token-id driven gather)
        copies = []
        for b in range(Bp):
            cp = pltpu.make_async_copy(
                emb_ref.at[pl.ds(tok_ref[b], 1)],   # (1, Dp) table row
                x_buf.at[pl.ds(b, 1)],              # (1, Dp) destination row
                sem.at[b])
            cp.start()
            copies.append(cp)

        # TODO(synk): nn.Dropout skipped (identity / eval-mode semantics).

        # 2) hide the gather behind the layer-0 hidden-side matmul (needs no x)
        h_prev = hid_ref[0]                                          # (Bp, Hp) f32
        gh = jnp.dot(h_prev.astype(jnp.bfloat16), wh_ref[0],
                     preferred_element_type=jnp.float32) + bh_ref[0]  # (Bp, 3Hp)

        for cp in copies:
            cp.wait()
        x = x_buf[...]                                               # (Bp, Dp) f32

        # 3) stacked GRU layers (small static L -> unrolled)
        for l in range(L):
            if l > 0:
                h_prev = hid_ref[l]
                gh = jnp.dot(h_prev.astype(jnp.bfloat16), wh_ref[l],
                             preferred_element_type=jnp.float32) + bh_ref[l]
                # layers >= 1: input width is Hp; only the first Hp rows of the
                # padded (Dp, 3Hp) weight are non-zero -> static ref slice.
                gi = jnp.dot(x.astype(jnp.bfloat16),
                             wi_ref[l, pl.ds(0, Hp), :],
                             preferred_element_type=jnp.float32) + bi_ref[l]
            else:
                gi = jnp.dot(x.astype(jnp.bfloat16), wi_ref[0],
                             preferred_element_type=jnp.float32) + bi_ref[0]

            # PyTorch GRU semantics: n = tanh(i_n + b_in + r * (h_n + b_hn))
            r = jax.nn.sigmoid(gi[:, 0 * Hp:1 * Hp] + gh[:, 0 * Hp:1 * Hp])
            z = jax.nn.sigmoid(gi[:, 1 * Hp:2 * Hp] + gh[:, 1 * Hp:2 * Hp])
            n = jnp.tanh(gi[:, 2 * Hp:3 * Hp] + r * gh[:, 2 * Hp:3 * Hp])
            h_new = (1.0 - z) * n + z * h_prev                       # (Bp, Hp) f32
            hnew_ref[l] = h_new
            x = h_new

        hlast_sc[...] = x                                            # top-layer hidden
        m_sc[...] = jnp.full((Bp, 1), NEG_INF, jnp.float32)
        l_sc[...] = jnp.zeros((Bp, 1), jnp.float32)

    # ---------- phase B (every grid step): streamed fc tile + online softmax --
    h = hlast_sc[...]                                                # (Bp, Hp) f32
    logits = jnp.dot(h.astype(jnp.bfloat16), fcw_ref[...],
                     preferred_element_type=jnp.float32) + fcb_ref[...]   # (Bp, TILE_V)
    logits_ref[...] = logits                                         # lane-dense store

    m_prev = m_sc[...]
    m_new = jnp.maximum(m_prev, jnp.max(logits, axis=-1, keepdims=True))
    l_sc[...] = (l_sc[...] * jnp.exp(m_prev - m_new)
                 + jnp.sum(jnp.exp(logits - m_new), axis=-1, keepdims=True))
    m_sc[...] = m_new

    @pl.when(j == pl.num_programs(0) - 1)
    def _finalize():
        lse_ref[...] = m_sc[...] + jnp.log(l_sc[...])


# ------------------------------ host wrapper ---------------------------------

def decoder_forward(packed, token_inputs, hidden, tgt_vocab_size, tile_v):
    """One decode step (matches Decoder.forward, eval mode).

    token_inputs: (B,) int token ids
    hidden:       (L, B, H) f32
    returns (log_probs (B, V), new_hidden (L, B, H))
    """
    B = token_inputs.shape[0]
    L, _, H = hidden.shape
    wi, wh = packed["wi"], packed["wh"]
    Dp, Hp = wi.shape[1], wh.shape[1]
    Vp = packed["fc_w"].shape[1]
    NV = Vp // tile_v
    Bp = _round_up(max(B, SUBLANE), SUBLANE)
    V_tbl = packed["embedding"].shape[0]

    # clamp ids so the gather DMA can never go out of bounds
    tok = jnp.clip(token_inputs.astype(jnp.int32), 0, V_tbl - 1)
    tok_p = jnp.zeros((Bp,), jnp.int32).at[:B].set(tok)
    hid_p = jnp.zeros((L, Bp, Hp), jnp.float32).at[:, :B, :H].set(
        hidden.astype(jnp.float32))
    # TODO(synk): in an autoregressive loop keep hidden in padded (L,Bp,Hp) form
    #             across steps and alias it (input_output_aliases) to avoid the
    #             per-step pad/copy entirely.

    grid_spec = pltpu.PrefetchScalarGridSpec(
        num_scalar_prefetch=1,                 # token ids -> SMEM
        grid=(NV,),                            # vocab tiles (sequential: carries softmax stats)
        in_specs=[
            pl.BlockSpec(memory_space=pl.ANY),                              # embedding (HBM)
            pl.BlockSpec((L, Bp, Hp), lambda j, tok: (0, 0, 0)),            # hidden (resident)
            pl.BlockSpec((L, Dp, 3 * Hp), lambda j, tok: (0, 0, 0)),        # Wi (resident)
            pl.BlockSpec((L, Hp, 3 * Hp), lambda j, tok: (0, 0, 0)),        # Wh (resident)
            pl.BlockSpec((L, 1, 3 * Hp), lambda j, tok: (0, 0, 0)),         # b_ih
            pl.BlockSpec((L, 1, 3 * Hp), lambda j, tok: (0, 0, 0)),         # b_hh
            pl.BlockSpec((Hp, tile_v), lambda j, tok: (0, j)),              # fc weight tile (streamed)
            pl.BlockSpec((1, tile_v), lambda j, tok: (0, j)),               # fc bias tile
        ],
        out_specs=[
            pl.BlockSpec((Bp, tile_v), lambda j, tok: (0, j)),              # raw logits tile
            pl.BlockSpec((L, Bp, Hp), lambda j, tok: (0, 0, 0)),            # new hidden
            pl.BlockSpec((Bp, 1), lambda j, tok: (0, 0)),                   # log-sum-exp
        ],
        scratch_shapes=[
            pltpu.VMEM((Bp, Dp), jnp.float32),        # gathered embeddings
            pltpu.VMEM((Bp, Hp), jnp.float32),        # top-layer hidden (carried over tiles)
            pltpu.VMEM((Bp, 1), jnp.float32),         # running max
            pltpu.VMEM((Bp, 1), jnp.float32),         # running sum
            pltpu.SemaphoreType.DMA((Bp,)),
        ],
    )

    logits_p, hnew_p, lse_p = pl.pallas_call(
        _decoder_step_kernel,
        out_shape=(jax.ShapeDtypeStruct((Bp, Vp), jnp.float32),
                   jax.ShapeDtypeStruct((L, Bp, Hp), jnp.float32),
                   jax.ShapeDtypeStruct((Bp, 1), jnp.float32)),
        grid_spec=grid_spec,
        compiler_params=pltpu.CompilerParams(
            dimension_semantics=("arbitrary",),       # softmax carry -> sequential
            vmem_limit_bytes=32 * 1024 * 1024),
    )(tok_p, packed["embedding"], hid_p, wi, wh, packed["bi"], packed["bh"],
      packed["fc_w"], packed["fc_b"])

    # cheap second pass: normalize the streamed logits (fused by XLA with slice)
    log_probs = logits_p[:B, :tgt_vocab_size] - lse_p[:B]
    return log_probs, hnew_p[:, :B, :H]


# ------------------------ parameter packing / padding ------------------------

def pack_decoder_params(params, tile_v):
    """Pad + repack PyTorch-layout parameters into the fused-kernel layout."""
    emb = params["embedding"]                  # (V, E)
    V, E = emb.shape
    H = params["gru"][0]["w_hh"].shape[1]
    L = len(params["gru"])

    Ep = _round_up(E, LANE)
    Hp = _round_up(H, LANE)
    Dp = max(Ep, Hp)                           # layer-0 input width (padded)
    Vp = _round_up(V, tile_v)

    emb_p = jnp.zeros((V, Dp), jnp.float32).at[:, :E].set(emb)

    wi = jnp.zeros((L, Dp, 3 * Hp), jnp.float32)
    wh = jnp.zeros((L, Hp, 3 * Hp), jnp.float32)
    bi = jnp.zeros((L, 1, 3 * Hp), jnp.float32)
    bh = jnp.zeros((L, 1, 3 * Hp), jnp.float32)
    for l, lp in enumerate(params["gru"]):
        in_dim = E if l == 0 else H
        w_ih, w_hh = lp["w_ih"], lp["w_hh"]    # (3H, in_dim), (3H, H) PyTorch layout
        b_ih, b_hh = lp["b_ih"], lp["b_hh"]    # (3H,), (3H,)
        for g in range(3):                     # gate order: r, z, n
            wi = wi.at[l, :in_dim, g * Hp:g * Hp + H].set(w_ih[g * H:(g + 1) * H].T)
            wh = wh.at[l, :H, g * Hp:g * Hp + H].set(w_hh[g * H:(g + 1) * H].T)
            bi = bi.at[l, 0, g * Hp:g * Hp + H].set(b_ih[g * H:(g + 1) * H])
            bh = bh.at[l, 0, g * Hp:g * Hp + H].set(b_hh[g * H:(g + 1) * H])

    fc_w_p = jnp.zeros((Hp, Vp), jnp.float32).at[:H, :V].set(params["fc_w"].T)
    fc_b_p = jnp.full((1, Vp), NEG_INF, jnp.float32).at[0, :V].set(params["fc_b"])

    return {
        "embedding": emb_p,                              # f32 (gather source)
        "wi": wi.astype(jnp.bfloat16),                   # bf16 matmul operands,
        "wh": wh.astype(jnp.bfloat16),                   # f32 accumulation in-kernel
        "bi": bi, "bh": bh,                              # f32 biases
        "fc_w": fc_w_p.astype(jnp.bfloat16),
        "fc_b": fc_b_p,                                  # f32 (-1e30 pad mask)
    }


# ------------------------ init + pure-JAX reference --------------------------

def init_params(key, tgt_vocab_size, embedding_dim, hidden_dim, num_layers):
    keys = jax.random.split(key, 3 + 4 * num_layers)
    scale = 0.1
    params = {
        "embedding": scale * jax.random.normal(
            keys[0], (tgt_vocab_size, embedding_dim), jnp.float32),
        "fc_w": scale * jax.random.normal(
            keys[1], (tgt_vocab_size, hidden_dim), jnp.float32),
        "fc_b": scale * jax.random.normal(
            keys[2], (tgt_vocab_size,), jnp.float32),
        "gru": [],
    }
    k = 3
    for l in range(num_layers):
        in_dim = embedding_dim if l == 0 else hidden_dim
        params["gru"].append({
            "w_ih": scale * jax.random.normal(
                keys[k + 0], (3 * hidden_dim, in_dim), jnp.float32),
            "w_hh": scale * jax.random.normal(
                keys[k + 1], (3 * hidden_dim, hidden_dim), jnp.float32),
            "b_ih": scale * jax.random.normal(
                keys[k + 2], (3 * hidden_dim,), jnp.float32),
            "b_hh": scale * jax.random.normal(
                keys[k + 3], (3 * hidden_dim,), jnp.float32),
        })
        k += 4
    return params


def decoder_reference(params, tokens, hidden):
    """Pure-JAX (XLA, f32) reference with PyTorch GRU semantics, eval dropout."""
    x = jnp.take(params["embedding"], tokens, axis=0)
    new_h = []
    for l, lp in enumerate(params["gru"]):
        h = hidden[l]
        H = h.shape[1]
        gi = x @ lp["w_ih"].T + lp["b_ih"]
        gh = h @ lp["w_hh"].T + lp["b_hh"]
        i_r, i_z, i_n = gi[:, :H], gi[:, H:2 * H], gi[:, 2 * H:]
        h_r, h_z, h_n = gh[:, :H], gh[:, H:2 * H], gh[:, 2 * H:]
        r = jax.nn.sigmoid(i_r + h_r)
        z = jax.nn.sigmoid(i_z + h_z)
        n = jnp.tanh(i_n + r * h_n)
        h = (1.0 - z) * n + z * h
        new_h.append(h)
        x = h
    logits = x @ params["fc_w"].T + params["fc_b"]
    return jax.nn.log_softmax(logits, axis=-1), jnp.stack(new_h, axis=0)


# ----------------------------------- main -------------------------------------

if __name__ == "__main__":
    TGT_VOCAB = 300          # not a multiple of the tile -> exercises vocab padding
    EMB_DIM = 32
    HIDDEN = 32
    NUM_LAYERS = 2
    BATCH = 4
    TILE_V = 128             # small test tile; use 1024-4096 for real vocabs

    root = jax.random.PRNGKey(0)
    k_param, k_tok, k_hid = jax.random.split(root, 3)

    params = init_params(k_param, TGT_VOCAB, EMB_DIM, HIDDEN, NUM_LAYERS)
    packed = pack_decoder_params(params, TILE_V)
    token_inputs = jax.random.randint(k_tok, (BATCH,), 0, TGT_VOCAB, dtype=jnp.int32)
    hidden = 0.1 * jax.random.normal(k_hid, (NUM_LAYERS, BATCH, HIDDEN), jnp.float32)

    step = jax.jit(decoder_forward, static_argnums=(3, 4))
    log_probs, new_hidden = step(packed, token_inputs, hidden, TGT_VOCAB, TILE_V)
    jax.block_until_ready((log_probs, new_hidden))

    assert log_probs.shape == (BATCH, TGT_VOCAB)
    assert new_hidden.shape == (NUM_LAYERS, BATCH, HIDDEN)

    # numerical check vs. pure-JAX f32 reference (looser tol: bf16 weights with
    # f32 accumulation in the kernel vs full-f32 XLA matmuls).
    ref_logp, ref_hidden = decoder_reference(params, token_inputs, hidden)
    assert bool(jnp.allclose(log_probs, ref_logp, atol=2e-2, rtol=2e-2)), (
        "log_probs mismatch, max abs err = %g"
        % float(jnp.max(jnp.abs(log_probs - ref_logp))))
    assert bool(jnp.allclose(new_hidden, ref_hidden, atol=2e-2, rtol=2e-2)), (
        "hidden mismatch, max abs err = %g"
        % float(jnp.max(jnp.abs(new_hidden - ref_hidden))))

    # rows of log-softmax must exp-sum to ~1 (online LSE over vocab tiles)
    row_sums = jnp.sum(jnp.exp(log_probs), axis=-1)
    assert bool(jnp.all(jnp.abs(row_sums - 1.0) < 1e-3))

    print("KERNEL_OK")
</pallas_src>

<mosaic_0001>
module attributes {stable_mosaic.version = 11 : i64} {
  func.func @_decoder_step_kernel(%arg0: i32, %arg1: memref<8xi32, #tpu.memory_space<smem>>, %arg2: memref<300x128xf32, #tpu.memory_space<any>>, %arg3: memref<2x8x128xf32, #tpu.memory_space<vmem>>, %arg4: memref<2x128x384xbf16, #tpu.memory_space<vmem>>, %arg5: memref<2x128x384xbf16, #tpu.memory_space<vmem>>, %arg6: memref<2x1x384xf32, #tpu.memory_space<vmem>>, %arg7: memref<2x1x384xf32, #tpu.memory_space<vmem>>, %arg8: memref<128x128xbf16, #tpu.memory_space<vmem>>, %arg9: memref<1x128xf32, #tpu.memory_space<vmem>>, %arg10: memref<8x128xf32, #tpu.memory_space<vmem>>, %arg11: memref<2x8x128xf32, #tpu.memory_space<vmem>>, %arg12: memref<8x1xf32, #tpu.memory_space<vmem>>, %arg13: memref<8x128xf32, #tpu.memory_space<vmem>>, %arg14: memref<8x128xf32, #tpu.memory_space<vmem>>, %arg15: memref<8x1xf32, #tpu.memory_space<vmem>>, %arg16: memref<8x1xf32, #tpu.memory_space<vmem>>, %arg17: memref<8x!tpu.dma_semaphore, #tpu.memory_space<semaphore_mem>>) attributes {dimension_semantics = [#tpu.dimension_semantics<arbitrary>], iteration_bounds = array<i64: 3>, scalar_prefetch = 1 : i64, scratch_operands = 5 : i64, tpu.core_type = #tpu.core_type<tc>, window_params = [{}, {pipeline_mode = #tpu.pipeline_mode<synchronous>, transform_indices = @transform_1, window_bounds = array<i64: 2, 8, 128>}, {pipeline_mode = #tpu.pipeline_mode<synchronous>, transform_indices = @transform_2, window_bounds = array<i64: 2, 128, 384>}, {pipeline_mode = #tpu.pipeline_mode<synchronous>, transform_indices = @transform_3, window_bounds = array<i64: 2, 128, 384>}, {pipeline_mode = #tpu.pipeline_mode<synchronous>, transform_indices = @transform_4, window_bounds = array<i64: 2, 1, 384>}, {pipeline_mode = #tpu.pipeline_mode<synchronous>, transform_indices = @transform_5, window_bounds = array<i64: 2, 1, 384>}, {transform_indices = @transform_6, window_bounds = array<i64: 128, 128>}, {transform_indices = @transform_7, window_bounds = array<i64: 1, 128>}, {transform_indices = @transform_8, window_bounds = array<i64: 8, 128>}, {pipeline_mode = #tpu.pipeline_mode<synchronous>, transform_indices = @transform_9, window_bounds = array<i64: 2, 8, 128>}, {pipeline_mode = #tpu.pipeline_mode<synchronous>, transform_indices = @transform_10, window_bounds = array<i64: 8, 1>}]} {
    %c0_i32 = arith.constant 0 : i32
    %0 = arith.cmpi eq, %arg0, %c0_i32 : i32
    %1 = arith.extui %0 : i1 to i32
    %c0_i32_0 = arith.constant 0 : i32
    %2 = arith.cmpi ne, %1, %c0_i32_0 : i32
    scf.if %2 {
      %c0_19 = arith.constant 0 : index
      %30 = memref.load %arg1[%c0_19] : memref<8xi32, #tpu.memory_space<smem>>
      %c0_i32_20 = arith.constant 0 : i32
      %c0_i32_21 = arith.constant 0 : i32
      %31 = tpu.memref_slice %arg2[%30, %c0_i32_21] : memref<300x128xf32, #tpu.memory_space<any>> -> memref<1x128xf32, #tpu.memory_space<any>>
      %c0_i32_22 = arith.constant 0 : i32
      %c0_i32_23 = arith.constant 0 : i32
      %32 = tpu.memref_slice %arg13[%c0_i32_22, %c0_i32_23] : memref<8x128xf32, #tpu.memory_space<vmem>> -> memref<1x128xf32, #tpu.memory_space<vmem>>
      %33 = tpu.memref_slice %arg17[%c0_i32_20] : memref<8x!tpu.dma_semaphore, #tpu.memory_space<semaphore_mem>> -> memref<1x!tpu.dma_semaphore, #tpu.memory_space<semaphore_mem>>
      %34 = tpu.memref_squeeze %33 : memref<1x!tpu.dma_semaphore, #tpu.memory_space<semaphore_mem>> -> memref<!tpu.dma_semaphore, #tpu.memory_space<semaphore_mem>>
      tpu.enqueue_dma source(%31 : memref<1x128xf32, #tpu.memory_space<any>>) target(%32 : memref<1x128xf32, #tpu.memory_space<vmem>>) target_semaphore(%34 : memref<!tpu.dma_semaphore, #tpu.memory_space<semaphore_mem>>)
      %c1 = arith.constant 1 : index
      %35 = memref.load %arg1[%c1] : memref<8xi32, #tpu.memory_space<smem>>
      %c1_i32 = arith.constant 1 : i32
      %c0_i32_24 = arith.constant 0 : i32
      %36 = tpu.memref_slice %arg2[%35, %c0_i32_24] : memref<300x128xf32, #tpu.memory_space<any>> -> memref<1x128xf32, #tpu.memory_space<any>>
      %c1_i32_25 = arith.constant 1 : i32
      %c0_i32_26 = arith.constant 0 : i32
      %37 = tpu.memref_slice %arg13[%c1_i32_25, %c0_i32_26] : memref<8x128xf32, #tpu.memory_space<vmem>> -> memref<1x128xf32, #tpu.memory_space<vmem>>
      %38 = tpu.memref_slice %arg17[%c1_i32] : memref<8x!tpu.dma_semaphore, #tpu.memory_space<semaphore_mem>> -> memref<1x!tpu.dma_semaphore, #tpu.memory_space<semaphore_mem>>
      %39 = tpu.memref_squeeze %38 : memref<1x!tpu.dma_semaphore, #tpu.memory_space<semaphore_mem>> -> memref<!tpu.dma_semaphore, #tpu.memory_space<semaphore_mem>>
      tpu.enqueue_dma source(%36 : memref<1x128xf32, #tpu.memory_space<any>>) target(%37 : memref<1x128xf32, #tpu.memory_space<vmem>>) target_semaphore(%39 : memref<!tpu.dma_semaphore, #tpu.memory_space<semaphore_mem>>)
      %c2 = arith.constant 2 : index
      %40 = memref.load %arg1[%c2] : memref<8xi32, #tpu.memory_space<smem>>
      %c2_i32_27 = arith.constant 2 : i32
      %c0_i32_28 = arith.constant 0 : i32
      %41 = tpu.memref_slice %arg2[%40, %c0_i32_28] : memref<300x128xf32, #tpu.memory_space<any>> -> memref<1x128xf32, #tpu.memory_space<any>>
      %c2_i32_29 = arith.constant 2 : i32
      %c0_i32_30 = arith.constant 0 : i32
      %42 = tpu.memref_slice %arg13[%c2_i32_29, %c0_i32_30] : memref<8x128xf32, #tpu.memory_space<vmem>> -> memref<1x128xf32, #tpu.memory_space<vmem>>
      %43 = tpu.memref_slice %arg17[%c2_i32_27] : memref<8x!tpu.dma_semaphore, #tpu.memory_space<semaphore_mem>> -> memref<1x!tpu.dma_semaphore, #tpu.memory_space<semaphore_mem>>
      %44 = tpu.memref_squeeze %43 : memref<1x!tpu.dma_semaphore, #tpu.memory_space<semaphore_mem>> -> memref<!tpu.dma_semaphore, #tpu.memory_space<semaphore_mem>>
      tpu.enqueue_dma source(%41 : memref<1x128xf32, #tpu.memory_space<any>>) target(%42 : memref<1x128xf32, #tpu.memory_space<vmem>>) target_semaphore(%44 : memref<!tpu.dma_semaphore, #tpu.memory_space<semaphore_mem>>)
      %c3 = arith.constant 3 : index
      %45 = memref.load %arg1[%c3] : memref<8xi32, #tpu.memory_space<smem>>
      %c3_i32 = arith.constant 3 : i32
      %c0_i32_31 = arith.constant 0 : i32
      %46 = tpu.memref_slice %arg2[%45, %c0_i32_31] : memref<300x128xf32, #tpu.memory_space<any>> -> memref<1x128xf32, #tpu.memory_space<any>>
      %c3_i32_32 = arith.constant 3 : i32
      %c0_i32_33 = arith.constant 0 : i32
      %47 = tpu.memref_slice %arg13[%c3_i32_32, %c0_i32_33] : memref<8x128xf32, #tpu.memory_space<vmem>> -> memref<1x128xf32, #tpu.memory_space<vmem>>
      %48 = tpu.memref_slice %arg17[%c3_i32] : memref<8x!tpu.dma_semaphore, #tpu.memory_space<semaphore_mem>> -> memref<1x!tpu.dma_semaphore, #tpu.memory_space<semaphore_mem>>
      %49 = tpu.memref_squeeze %48 : memref<1x!tpu.dma_semaphore, #tpu.memory_space<semaphore_mem>> -> memref<!tpu.dma_semaphore, #tpu.memory_space<semaphore_mem>>
      tpu.enqueue_dma source(%46 : memref<1x128xf32, #tpu.memory_space<any>>) target(%47 : memref<1x128xf32, #tpu.memory_space<vmem>>) target_semaphore(%49 : memref<!tpu.dma_semaphore, #tpu.memory_space<semaphore_mem>>)
      %c4 = arith.constant 4 : index
      %50 = memref.load %arg1[%c4] : memref<8xi32, #tpu.memory_space<smem>>
      %c4_i32 = arith.constant 4 : i32
      %c0_i32_34 = arith.constant 0 : i32
      %51 = tpu.memref_slice %arg2[%50, %c0_i32_34] : memref<300x128xf32, #tpu.memory_space<any>> -> memref<1x128xf32, #tpu.memory_space<any>>
      %c4_i32_35 = arith.constant 4 : i32
      %c0_i32_36 = arith.constant 0 : i32
      %52 = tpu.memref_slice %arg13[%c4_i32_35, %c0_i32_36] : memref<8x128xf32, #tpu.memory_space<vmem>> -> memref<1x128xf32, #tpu.memory_space<vmem>>
      %53 = tpu.memref_slice %arg17[%c4_i32] : memref<8x!tpu.dma_semaphore, #tpu.memory_space<semaphore_mem>> -> memref<1x!tpu.dma_semaphore, #tpu.memory_space<semaphore_mem>>
      %54 = tpu.memref_squeeze %53 : memref<1x!tpu.dma_semaphore, #tpu.memory_space<semaphore_mem>> -> memref<!tpu.dma_semaphore, #tpu.memory_space<semaphore_mem>>
      tpu.enqueue_dma source(%51 : memref<1x128xf32, #tpu.memory_space<any>>) target(%52 : memref<1x128xf32, #tpu.memory_space<vmem>>) target_semaphore(%54 : memref<!tpu.dma_semaphore, #tpu.memory_space<semaphore_mem>>)
      %c5 = arith.constant 5 : index
      %55 = memref.load %arg1[%c5] : memref<8xi32, #tpu.memory_space<smem>>
      %c5_i32 = arith.constant 5 : i32
      %c0_i32_37 = arith.constant 0 : i32
      %56 = tpu.memref_slice %arg2[%55, %c0_i32_37] : memref<300x128xf32, #tpu.memory_space<any>> -> memref<1x128xf32, #tpu.memory_space<any>>
      %c5_i32_38 = arith.constant 5 : i32
      %c0_i32_39 = arith.constant 0 : i32
      %57 = tpu.memref_slice %arg13[%c5_i32_38, %c0_i32_39] : memref<8x128xf32, #tpu.memory_space<vmem>> -> memref<1x128xf32, #tpu.memory_space<vmem>>
      %58 = tpu.memref_slice %arg17[%c5_i32] : memref<8x!tpu.dma_semaphore, #tpu.memory_space<semaphore_mem>> -> memref<1x!tpu.dma_semaphore, #tpu.memory_space<semaphore_mem>>
      %59 = tpu.memref_squeeze %58 : memref<1x!tpu.dma_semaphore, #tpu.memory_space<semaphore_mem>> -> memref<!tpu.dma_semaphore, #tpu.memory_space<semaphore_mem>>
      tpu.enqueue_dma source(%56 : memref<1x128xf32, #tpu.memory_space<any>>) target(%57 : memref<1x128xf32, #tpu.memory_space<vmem>>) target_semaphore(%59 : memref<!tpu.dma_semaphore, #tpu.memory_space<semaphore_mem>>)
      %c6 = arith.constant 6 : index
      %60 = memref.load %arg1[%c6] : memref<8xi32, #tpu.memory_space<smem>>
      %c6_i32 = arith.constant 6 : i32
      %c0_i32_40 = arith.constant 0 : i32
      %61 = tpu.memref_slice %arg2[%60, %c0_i32_40] : memref<300x128xf32, #tpu.memory_space<any>> -> memref<1x128xf32, #tpu.memory_space<any>>
      %c6_i32_41 = arith.constant 6 : i32
      %c0_i32_42 = arith.constant 0 : i32
      %62 = tpu.memref_slice %arg13[%c6_i32_41, %c0_i32_42] : memref<8x128xf32, #tpu.memory_space<vmem>> -> memref<1x128xf32, #tpu.memory_space<vmem>>
      %63 = tpu.memref_slice %arg17[%c6_i32] : memref<8x!tpu.dma_semaphore, #tpu.memory_space<semaphore_mem>> -> memref<1x!tpu.dma_semaphore, #tpu.memory_space<semaphore_mem>>
      %64 = tpu.memref_squeeze %63 : memref<1x!tpu.dma_semaphore, #tpu.memory_space<semaphore_mem>> -> memref<!tpu.dma_semaphore, #tpu.memory_space<semaphore_mem>>
      tpu.enqueue_dma source(%61 : memref<1x128xf32, #tpu.memory_space<any>>) target(%62 : memref<1x128xf32, #tpu.memory_space<vmem>>) target_semaphore(%64 : memref<!tpu.dma_semaphore, #tpu.memory_space<semaphore_mem>>)
      %c7 = arith.constant 7 : index
      %65 = memref.load %arg1[%c7] : memref<8xi32, #tpu.memory_space<smem>>
      %c7_i32 = arith.constant 7 : i32
      %c0_i32_43 = arith.constant 0 : i32
      %66 = tpu.memref_slice %arg2[%65, %c0_i32_43] : memref<300x128xf32, #tpu.memory_space<any>> -> memref<1x128xf32, #tpu.memory_space<any>>
      %c7_i32_44 = arith.constant 7 : i32
      %c0_i32_45 = arith.constant 0 : i32
      %67 = tpu.memref_slice %arg13[%c7_i32_44, %c0_i32_45] : memref<8x128xf32, #tpu.memory_space<vmem>> -> memref<1x128xf32, #tpu.memory_space<vmem>>
      %68 = tpu.memref_slice %arg17[%c7_i32] : memref<8x!tpu.dma_semaphore, #tpu.memory_space<semaphore_mem>> -> memref<1x!tpu.dma_semaphore, #tpu.memory_space<semaphore_mem>>
      %69 = tpu.memref_squeeze %68 : memref<1x!tpu.dma_semaphore, #tpu.memory_space<semaphore_mem>> -> memref<!tpu.dma_semaphore, #tpu.memory_space<semaphore_mem>>
      tpu.enqueue_dma source(%66 : memref<1x128xf32, #tpu.memory_space<any>>) target(%67 : memref<1x128xf32, #tpu.memory_space<vmem>>) target_semaphore(%69 : memref<!tpu.dma_semaphore, #tpu.memory_space<semaphore_mem>>)
      %c0_46 = arith.constant 0 : index
      %c0_47 = arith.constant 0 : index
      %c0_48 = arith.constant 0 : index
      %70 = vector.load %arg3[%c0_46, %c0_47, %c0_48] : memref<2x8x128xf32, #tpu.memory_space<vmem>>, vector<1x8x128xf32>
      %71 = vector.shape_cast %70 : vector<1x8x128xf32> to vector<8x128xf32>
      %72 = arith.truncf %71 : vector<8x128xf32> to vector<8x128xbf16>
      %c0_49 = arith.constant 0 : index
      %c0_50 = arith.constant 0 : index
      %c0_51 = arith.constant 0 : index
      %73 = vector.load %arg5[%c0_49, %c0_50, %c0_51] : memref<2x128x384xbf16, #tpu.memory_space<vmem>>, vector<1x128x384xbf16>
      %74 = vector.shape_cast %73 : vector<1x128x384xbf16> to vector<128x384xbf16>
      %cst_52 = arith.constant dense<0.000000e+00> : vector<8x384xf32>
      %75 = tpu.matmul %72, %74, %cst_52 {dimension_numbers = #tpu.dot_dimension_numbers<[1], [0], [0], [1], [0, 0, 1, 1], [], []>} : vector<8x128xbf16>, vector<128x384xbf16>, vector<8x384xf32> -> vector<8x384xf32>
      %c0_53 = arith.constant 0 : index
      %c0_54 = arith.constant 0 : index
      %c0_55 = arith.constant 0 : index
      %76 = vector.load %arg7[%c0_53, %c0_54, %c0_55] : memref<2x1x384xf32, #tpu.memory_space<vmem>>, vector<1x1x384xf32>
      %77 = vector.shape_cast %76 : vector<1x1x384xf32> to vector<1x384xf32>
      %78 = vector.broadcast %77 : vector<1x384xf32> to vector<8x384xf32>
      %79 = arith.addf %75, %78 : vector<8x384xf32>
      %c0_i32_56 = arith.constant 0 : i32
      %c0_i32_57 = arith.constant 0 : i32
      %80 = tpu.memref_slice %arg2[%30, %c0_i32_57] : memref<300x128xf32, #tpu.memory_space<any>> -> memref<1x128xf32, #tpu.memory_space<any>>
      %c0_i32_58 = arith.constant 0 : i32
      %c0_i32_59 = arith.constant 0 : i32
      %81 = tpu.memref_slice %arg13[%c0_i32_58, %c0_i32_59] : memref<8x128xf32, #tpu.memory_space<vmem>> -> memref<1x128xf32, #tpu.memory_space<vmem>>
      %82 = tpu.memref_slice %arg17[%c0_i32_56] : memref<8x!tpu.dma_semaphore, #tpu.memory_space<semaphore_mem>> -> memref<1x!tpu.dma_semaphore, #tpu.memory_space<semaphore_mem>>
      %83 = tpu.memref_squeeze %82 : memref<1x!tpu.dma_semaphore, #tpu.memory_space<semaphore_mem>> -> memref<!tpu.dma_semaphore, #tpu.memory_space<semaphore_mem>>
      tpu.wait_dma2 semaphore(%83 : memref<!tpu.dma_semaphore, #tpu.memory_space<semaphore_mem>>) src(%80 : memref<1x128xf32, #tpu.memory_space<any>>) dst(%81 : memref<1x128xf32, #tpu.memory_space<vmem>>)
      %c1_i32_60 = arith.constant 1 : i32
      %c0_i32_61 = arith.constant 0 : i32
      %84 = tpu.memref_slice %arg2[%35, %c0_i32_61] : memref<300x128xf32, #tpu.memory_space<any>> -> memref<1x128xf32, #tpu.memory_space<any>>
      %c1_i32_62 = arith.constant 1 : i32
      %c0_i32_63 = arith.constant 0 : i32
      %85 = tpu.memref_slice %arg13[%c1_i32_62, %c0_i32_63] : memref<8x128xf32, #tpu.memory_space<vmem>> -> memref<1x128xf32, #tpu.memory_space<vmem>>
      %86 = tpu.memref_slice %arg17[%c1_i32_60] : memref<8x!tpu.dma_semaphore, #tpu.memory_space<semaphore_mem>> -> memref<1x!tpu.dma_semaphore, #tpu.memory_space<semaphore_mem>>
      %87 = tpu.memref_squeeze %86 : memref<1x!tpu.dma_semaphore, #tpu.memory_space<semaphore_mem>> -> memref<!tpu.dma_semaphore, #tpu.memory_space<semaphore_mem>>
      tpu.wait_dma2 semaphore(%87 : memref<!tpu.dma_semaphore, #tpu.memory_space<semaphore_mem>>) src(%84 : memref<1x128xf32, #tpu.memory_space<any>>) dst(%85 : memref<1x128xf32, #tpu.memory_space<vmem>>)
      %c2_i32_64 = arith.constant 2 : i32
      %c0_i32_65 = arith.constant 0 : i32
      %88 = tpu.memref_slice %arg2[%40, %c0_i32_65] : memref<300x128xf32, #tpu.memory_space<any>> -> memref<1x128xf32, #tpu.memory_space<any>>
      %c2_i32_66 = arith.constant 2 : i32
      %c0_i32_67 = arith.constant 0 : i32
      %89 = tpu.memref_slice %arg13[%c2_i32_66, %c0_i32_67] : memref<8x128xf32, #tpu.memory_space<vmem>> -> memref<1x128xf32, #tpu.memory_space<vmem>>
      %90 = tpu.memref_slice %arg17[%c2_i32_64] : memref<8x!tpu.dma_semaphore, #tpu.memory_space<semaphore_mem>> -> memref<1x!tpu.dma_semaphore, #tpu.memory_space<semaphore_mem>>
      %91 = tpu.memref_squeeze %90 : memref<1x!tpu.dma_semaphore, #tpu.memory_space<semaphore_mem>> -> memref<!tpu.dma_semaphore, #tpu.memory_space<semaphore_mem>>
      tpu.wait_dma2 semaphore(%91 : memref<!tpu.dma_semaphore, #tpu.memory_space<semaphore_mem>>) src(%88 : memref<1x128xf32, #tpu.memory_space<any>>) dst(%89 : memref<1x128xf32, #tpu.memory_space<vmem>>)
      %c3_i32_68 = arith.constant 3 : i32
      %c0_i32_69 = arith.constant 0 : i32
      %92 = tpu.memref_slice %arg2[%45, %c0_i32_69] : memref<300x128xf32, #tpu.memory_space<any>> -> memref<1x128xf32, #tpu.memory_space<any>>
      %c3_i32_70 = arith.constant 3 : i32
      %c0_i32_71 = arith.constant 0 : i32
      %93 = tpu.memref_slice %arg13[%c3_i32_70, %c0_i32_71] : memref<8x128xf32, #tpu.memory_space<vmem>> -> memref<1x128xf32, #tpu.memory_space<vmem>>
      %94 = tpu.memref_slice %arg17[%c3_i32_68] : memref<8x!tpu.dma_semaphore, #tpu.memory_space<semaphore_mem>> -> memref<1x!tpu.dma_semaphore, #tpu.memory_space<semaphore_mem>>
      %95 = tpu.memref_squeeze %94 : memref<1x!tpu.dma_semaphore, #tpu.memory_space<semaphore_mem>> -> memref<!tpu.dma_semaphore, #tpu.memory_space<semaphore_mem>>
      tpu.wait_dma2 semaphore(%95 : memref<!tpu.dma_semaphore, #tpu.memory_space<semaphore_mem>>) src(%92 : memref<1x128xf32, #tpu.memory_space<any>>) dst(%93 : memref<1x128xf32, #tpu.memory_space<vmem>>)
      %c4_i32_72 = arith.constant 4 : i32
      %c0_i32_73 = arith.constant 0 : i32
      %96 = tpu.memref_slice %arg2[%50, %c0_i32_73] : memref<300x128xf32, #tpu.memory_space<any>> -> memref<1x128xf32, #tpu.memory_space<any>>
      %c4_i32_74 = arith.constant 4 : i32
      %c0_i32_75 = arith.constant 0 : i32
      %97 = tpu.memref_slice %arg13[%c4_i32_74, %c0_i32_75] : memref<8x128xf32, #tpu.memory_space<vmem>> -> memref<1x128xf32, #tpu.memory_space<vmem>>
      %98 = tpu.memref_slice %arg17[%c4_i32_72] : memref<8x!tpu.dma_semaphore, #tpu.memory_space<semaphore_mem>> -> memref<1x!tpu.dma_semaphore, #tpu.memory_space<semaphore_mem>>
      %99 = tpu.memref_squeeze %98 : memref<1x!tpu.dma_semaphore, #tpu.memory_space<semaphore_mem>> -> memref<!tpu.dma_semaphore, #tpu.memory_space<semaphore_mem>>
      tpu.wait_dma2 semaphore(%99 : memref<!tpu.dma_semaphore, #tpu.memory_space<semaphore_mem>>) src(%96 : memref<1x128xf32, #tpu.memory_space<any>>) dst(%97 : memref<1x128xf32, #tpu.memory_space<vmem>>)
      %c5_i32_76 = arith.constant 5 : i32
      %c0_i32_77 = arith.constant 0 : i32
      %100 = tpu.memref_slice %arg2[%55, %c0_i32_77] : memref<300x128xf32, #tpu.memory_space<any>> -> memref<1x128xf32, #tpu.memory_space<any>>
      %c5_i32_78 = arith.constant 5 : i32
      %c0_i32_79 = arith.constant 0 : i32
      %101 = tpu.memref_slice %arg13[%c5_i32_78, %c0_i32_79] : memref<8x128xf32, #tpu.memory_space<vmem>> -> memref<1x128xf32, #tpu.memory_space<vmem>>
      %102 = tpu.memref_slice %arg17[%c5_i32_76] : memref<8x!tpu.dma_semaphore, #tpu.memory_space<semaphore_mem>> -> memref<1x!tpu.dma_semaphore, #tpu.memory_space<semaphore_mem>>
      %103 = tpu.memref_squeeze %102 : memref<1x!tpu.dma_semaphore, #tpu.memory_space<semaphore_mem>> -> memref<!tpu.dma_semaphore, #tpu.memory_space<semaphore_mem>>
      tpu.wait_dma2 semaphore(%103 : memref<!tpu.dma_semaphore, #tpu.memory_space<semaphore_mem>>) src(%100 : memref<1x128xf32, #tpu.memory_space<any>>) dst(%101 : memref<1x128xf32, #tpu.memory_space<vmem>>)
      %c6_i32_80 = arith.constant 6 : i32
      %c0_i32_81 = arith.constant 0 : i32
      %104 = tpu.memref_slice %arg2[%60, %c0_i32_81] : memref<300x128xf32, #tpu.memory_space<any>> -> memref<1x128xf32, #tpu.memory_space<any>>
      %c6_i32_82 = arith.constant 6 : i32
      %c0_i32_83 = arith.constant 0 : i32
      %105 = tpu.memref_slice %arg13[%c6_i32_82, %c0_i32_83] : memref<8x128xf32, #tpu.memory_space<vmem>> -> memref<1x128xf32, #tpu.memory_space<vmem>>
      %106 = tpu.memref_slice %arg17[%c6_i32_80] : memref<8x!tpu.dma_semaphore, #tpu.memory_space<semaphore_mem>> -> memref<1x!tpu.dma_semaphore, #tpu.memory_space<semaphore_mem>>
      %107 = tpu.memref_squeeze %106 : memref<1x!tpu.dma_semaphore, #tpu.memory_space<semaphore_mem>> -> memref<!tpu.dma_semaphore, #tpu.memory_space<semaphore_mem>>
      tpu.wait_dma2 semaphore(%107 : memref<!tpu.dma_semaphore, #tpu.memory_space<semaphore_mem>>) src(%104 : memref<1x128xf32, #tpu.memory_space<any>>) dst(%105 : memref<1x128xf32, #tpu.memory_space<vmem>>)
      %c7_i32_84 = arith.constant 7 : i32
      %c0_i32_85 = arith.constant 0 : i32
      %108 = tpu.memref_slice %arg2[%65, %c0_i32_85] : memref<300x128xf32, #tpu.memory_space<any>> -> memref<1x128xf32, #tpu.memory_space<any>>
      %c7_i32_86 = arith.constant 7 : i32
      %c0_i32_87 = arith.constant 0 : i32
      %109 = tpu.memref_slice %arg13[%c7_i32_86, %c0_i32_87] : memref<8x128xf32, #tpu.memory_space<vmem>> -> memref<1x128xf32, #tpu.memory_space<vmem>>
      %110 = tpu.memref_slice %arg17[%c7_i32_84] : memref<8x!tpu.dma_semaphore, #tpu.memory_space<semaphore_mem>> -> memref<1x!tpu.dma_semaphore, #tpu.memory_space<semaphore_mem>>
      %111 = tpu.memref_squeeze %110 : memref<1x!tpu.dma_semaphore, #tpu.memory_space<semaphore_mem>> -> memref<!tpu.dma_semaphore, #tpu.memory_space<semaphore_mem>>
      tpu.wait_dma2 semaphore(%111 : memref<!tpu.dma_semaphore, #tpu.memory_space<semaphore_mem>>) src(%108 : memref<1x128xf32, #tpu.memory_space<any>>) dst(%109 : memref<1x128xf32, #tpu.memory_space<vmem>>)
      %c0_88 = arith.constant 0 : index
      %c0_89 = arith.constant 0 : index
      %112 = vector.load %arg13[%c0_88, %c0_89] : memref<8x128xf32, #tpu.memory_space<vmem>>, vector<8x128xf32>
      %113 = arith.truncf %112 : vector<8x128xf32> to vector<8x128xbf16>
      %c0_90 = arith.constant 0 : index
      %c0_91 = arith.constant 0 : index
      %c0_92 = arith.constant 0 : index
      %114 = vector.load %arg4[%c0_90, %c0_91, %c0_92] : memref<2x128x384xbf16, #tpu.memory_space<vmem>>, vector<1x128x384xbf16>
      %115 = vector.shape_cast %114 : vector<1x128x384xbf16> to vector<128x384xbf16>
      %cst_93 = arith.constant dense<0.000000e+00> : vector<8x384xf32>
      %116 = tpu.matmul %113, %115, %cst_93 {dimension_numbers = #tpu.dot_dimension_numbers<[1], [0], [0], [1], [0, 0, 1, 1], [], []>} : vector<8x128xbf16>, vector<128x384xbf16>, vector<8x384xf32> -> vector<8x384xf32>
      %c0_94 = arith.constant 0 : index
      %c0_95 = arith.constant 0 : index
      %c0_96 = arith.constant 0 : index
      %117 = vector.load %arg6[%c0_94, %c0_95, %c0_96] : memref<2x1x384xf32, #tpu.memory_space<vmem>>, vector<1x1x384xf32>
      %118 = vector.shape_cast %117 : vector<1x1x384xf32> to vector<1x384xf32>
      %119 = vector.broadcast %118 : vector<1x384xf32> to vector<8x384xf32>
      %120 = arith.addf %116, %119 : vector<8x384xf32>
      %121 = vector.extract_strided_slice %120 {offsets = [0, 0], sizes = [8, 128], strides = [1, 1]} : vector<8x384xf32> to vector<8x128xf32>
      %122 = vector.extract_strided_slice %79 {offsets = [0, 0], sizes = [8, 128], strides = [1, 1]} : vector<8x384xf32> to vector<8x128xf32>
      %123 = arith.addf %121, %122 : vector<8x128xf32>
      %124 = arith.negf %123 : vector<8x128xf32>
      %125 = math.exp %124 : vector<8x128xf32>
      %cst_97 = arith.constant 1.000000e+00 : f32
      %126 = vector.broadcast %cst_97 : f32 to vector<8x128xf32>
      %127 = arith.addf %126, %125 : vector<8x128xf32>
      %128 = arith.divf %126, %127 : vector<8x128xf32>
      %129 = vector.extract_strided_slice %120 {offsets = [0, 128], sizes = [8, 128], strides = [1, 1]} : vector<8x384xf32> to vector<8x128xf32>
      %130 = vector.extract_strided_slice %79 {offsets = [0, 128], sizes = [8, 128], strides = [1, 1]} : vector<8x384xf32> to vector<8x128xf32>
      %131 = arith.addf %129, %130 : vector<8x128xf32>
      %132 = arith.negf %131 : vector<8x128xf32>
      %133 = math.exp %132 : vector<8x128xf32>
      %cst_98 = arith.constant 1.000000e+00 : f32
      %134 = vector.broadcast %cst_98 : f32 to vector<8x128xf32>
      %135 = arith.addf %134, %133 : vector<8x128xf32>
      %136 = arith.divf %134, %135 : vector<8x128xf32>
      %137 = vector.extract_strided_slice %120 {offsets = [0, 256], sizes = [8, 128], strides = [1, 1]} : vector<8x384xf32> to vector<8x128xf32>
      %138 = vector.extract_strided_slice %79 {offsets = [0, 256], sizes = [8, 128], strides = [1, 1]} : vector<8x384xf32> to vector<8x128xf32>
      %139 = arith.mulf %128, %138 : vector<8x128xf32>
      %140 = arith.addf %137, %139 : vector<8x128xf32>
      %141 = math.tanh %140 : vector<8x128xf32>
      %cst_99 = arith.constant 1.000000e+00 : f32
      %142 = vector.broadcast %cst_99 : f32 to vector<8x128xf32>
      %143 = arith.subf %142, %136 : vector<8x128xf32>
      %144 = arith.mulf %143, %141 : vector<8x128xf32>
      %145 = arith.mulf %136, %71 : vector<8x128xf32>
      %146 = arith.addf %144, %145 : vector<8x128xf32>
      %c0_100 = arith.constant 0 : index
      %c0_101 = arith.constant 0 : index
      %c0_102 = arith.constant 0 : index
      %147 = vector.load %arg11[%c0_100, %c0_101, %c0_102] : memref<2x8x128xf32, #tpu.memory_space<vmem>>, vector<1x8x128xf32>
      %148 = vector.shape_cast %147 : vector<1x8x128xf32> to vector<8x128xf32>
      %149 = vector.shape_cast %146 : vector<8x128xf32> to vector<1x8x128xf32>
      tpu.vector_store %arg11[%c0_100, %c0_101, %c0_102], %149 {strides = array<i32>} : memref<2x8x128xf32, #tpu.memory_space<vmem>>, vector<1x8x128xf32>,
      %c1_103 = arith.constant 1 : index
      %c0_104 = arith.constant 0 : index
      %c0_105 = arith.constant 0 : index
      %150 = vector.load %arg3[%c1_103, %c0_104, %c0_105] : memref<2x8x128xf32, #tpu.memory_space<vmem>>, vector<1x8x128xf32>
      %151 = vector.shape_cast %150 : vector<1x8x128xf32> to vector<8x128xf32>
      %152 = arith.truncf %151 : vector<8x128xf32> to vector<8x128xbf16>
      %c1_106 = arith.constant 1 : index
      %c0_107 = arith.constant 0 : index
      %c0_108 = arith.constant 0 : index
      %153 = vector.load %arg5[%c1_106, %c0_107, %c0_108] : memref<2x128x384xbf16, #tpu.memory_space<vmem>>, vector<1x128x384xbf16>
      %154 = vector.shape_cast %153 : vector<1x128x384xbf16> to vector<128x384xbf16>
      %cst_109 = arith.constant dense<0.000000e+00> : vector<8x384xf32>
      %155 = tpu.matmul %152, %154, %cst_109 {dimension_numbers = #tpu.dot_dimension_numbers<[1], [0], [0], [1], [0, 0, 1, 1], [], []>} : vector<8x128xbf16>, vector<128x384xbf16>, vector<8x384xf32> -> vector<8x384xf32>
      %c1_110 = arith.constant 1 : index
      %c0_111 = arith.constant 0 : index
      %c0_112 = arith.constant 0 : index
      %156 = vector.load %arg7[%c1_110, %c0_111, %c0_112] : memref<2x1x384xf32, #tpu.memory_space<vmem>>, vector<1x1x384xf32>
      %157 = vector.shape_cast %156 : vector<1x1x384xf32> to vector<1x384xf32>
      %158 = vector.broadcast %157 : vector<1x384xf32> to vector<8x384xf32>
      %159 = arith.addf %155, %158 : vector<8x384xf32>
      %160 = arith.truncf %146 : vector<8x128xf32> to vector<8x128xbf16>
      %c1_113 = arith.constant 1 : index
      %c0_114 = arith.constant 0 : index
      %c0_115 = arith.constant 0 : index
      %161 = vector.load %arg4[%c1_113, %c0_114, %c0_115] : memref<2x128x384xbf16, #tpu.memory_space<vmem>>, vector<1x128x384xbf16>
      %162 = vector.shape_cast %161 : vector<1x128x384xbf16> to vector<128x384xbf16>
      %cst_116 = arith.constant dense<0.000000e+00> : vector<8x384xf32>
      %163 = tpu.matmul %160, %162, %cst_116 {dimension_numbers = #tpu.dot_dimension_numbers<[1], [0], [0], [1], [0, 0, 1, 1], [], []>} : vector<8x128xbf16>, vector<128x384xbf16>, vector<8x384xf32> -> vector<8x384xf32>
      %c1_117 = arith.constant 1 : index
      %c0_118 = arith.constant 0 : index
      %c0_119 = arith.constant 0 : index
      %164 = vector.load %arg6[%c1_117, %c0_118, %c0_119] : memref<2x1x384xf32, #tpu.memory_space<vmem>>, vector<1x1x384xf32>
      %165 = vector.shape_cast %164 : vector<1x1x384xf32> to vector<1x384xf32>
      %166 = vector.broadcast %165 : vector<1x384xf32> to vector<8x384xf32>
      %167 = arith.addf %163, %166 : vector<8x384xf32>
      %168 = vector.extract_strided_slice %167 {offsets = [0, 0], sizes = [8, 128], strides = [1, 1]} : vector<8x384xf32> to vector<8x128xf32>
      %169 = vector.extract_strided_slice %159 {offsets = [0, 0], sizes = [8, 128], strides = [1, 1]} : vector<8x384xf32> to vector<8x128xf32>
      %170 = arith.addf %168, %169 : vector<8x128xf32>
      %171 = arith.negf %170 : vector<8x128xf32>
      %172 = math.exp %171 : vector<8x128xf32>
      %cst_120 = arith.constant 1.000000e+00 : f32
      %173 = vector.broadcast %cst_120 : f32 to vector<8x128xf32>
      %174 = arith.addf %173, %172 : vector<8x128xf32>
      %175 = arith.divf %173, %174 : vector<8x128xf32>
      %176 = vector.extract_strided_slice %167 {offsets = [0, 128], sizes = [8, 128], strides = [1, 1]} : vector<8x384xf32> to vector<8x128xf32>
      %177 = vector.extract_strided_slice %159 {offsets = [0, 128], sizes = [8, 128], strides = [1, 1]} : vector<8x384xf32> to vector<8x128xf32>
      %178 = arith.addf %176, %177 : vector<8x128xf32>
      %179 = arith.negf %178 : vector<8x128xf32>
      %180 = math.exp %179 : vector<8x128xf32>
      %cst_121 = arith.constant 1.000000e+00 : f32
      %181 = vector.broadcast %cst_121 : f32 to vector<8x128xf32>
      %182 = arith.addf %181, %180 : vector<8x128xf32>
      %183 = arith.divf %181, %182 : vector<8x128xf32>
      %184 = vector.extract_strided_slice %167 {offsets = [0, 256], sizes = [8, 128], strides = [1, 1]} : vector<8x384xf32> to vector<8x128xf32>
      %185 = vector.extract_strided_slice %159 {offsets = [0, 256], sizes = [8, 128], strides = [1, 1]} : vector<8x384xf32> to vector<8x128xf32>
      %186 = arith.mulf %175, %185 : vector<8x128xf32>
      %187 = arith.addf %184, %186 : vector<8x128xf32>
      %188 = math.tanh %187 : vector<8x128xf32>
      %cst_122 = arith.constant 1.000000e+00 : f32
      %189 = vector.broadcast %cst_122 : f32 to vector<8x128xf32>
      %190 = arith.subf %189, %183 : vector<8x128xf32>
      %191 = arith.mulf %190, %188 : vector<8x128xf32>
      %192 = arith.mulf %183, %151 : vector<8x128xf32>
      %193 = arith.addf %191, %192 : vector<8x128xf32>
      %c1_123 = arith.constant 1 : index
      %c0_124 = arith.constant 0 : index
      %c0_125 = arith.constant 0 : index
      %194 = vector.load %arg11[%c1_123, %c0_124, %c0_125] : memref<2x8x128xf32, #tpu.memory_space<vmem>>, vector<1x8x128xf32>
      %195 = vector.shape_cast %194 : vector<1x8x128xf32> to vector<8x128xf32>
      %196 = vector.shape_cast %193 : vector<8x128xf32> to vector<1x8x128xf32>
      tpu.vector_store %arg11[%c1_123, %c0_124, %c0_125], %196 {strides = array<i32>} : memref<2x8x128xf32, #tpu.memory_space<vmem>>, vector<1x8x128xf32>,
      %c0_126 = arith.constant 0 : index
      %c0_127 = arith.constant 0 : index
      %197 = vector.load %arg14[%c0_126, %c0_127] : memref<8x128xf32, #tpu.memory_space<vmem>>, vector<8x128xf32>
      tpu.vector_store %arg14[%c0_126, %c0_127], %193 {strides = array<i32>} : memref<8x128xf32, #tpu.memory_space<vmem>>, vector<8x128xf32>,
      %cst_128 = arith.constant -1.000000e+30 : f32
      %198 = vector.broadcast %cst_128 : f32 to vector<8x1xf32>
      %c0_129 = arith.constant 0 : index
      %c0_130 = arith.constant 0 : index
      %199 = vector.load %arg15[%c0_129, %c0_130] : memref<8x1xf32, #tpu.memory_space<vmem>>, vector<8x1xf32>
      tpu.vector_store %arg15[%c0_129, %c0_130], %198 {strides = array<i32>} : memref<8x1xf32, #tpu.memory_space<vmem>>, vector<8x1xf32>,
      %cst_131 = arith.constant 0.000000e+00 : f32
      %200 = vector.broadcast %cst_131 : f32 to vector<8x1xf32>
      %c0_132 = arith.constant 0 : index
      %c0_133 = arith.constant 0 : index
      %201 = vector.load %arg16[%c0_132, %c0_133] : memref<8x1xf32, #tpu.memory_space<vmem>>, vector<8x1xf32>
      tpu.vector_store %arg16[%c0_132, %c0_133], %200 {strides = array<i32>} : memref<8x1xf32, #tpu.memory_space<vmem>>, vector<8x1xf32>,
    } else {
    }
    %c0 = arith.constant 0 : index
    %c0_1 = arith.constant 0 : index
    %3 = vector.load %arg14[%c0, %c0_1] : memref<8x128xf32, #tpu.memory_space<vmem>>, vector<8x128xf32>
    %4 = arith.truncf %3 : vector<8x128xf32> to vector<8x128xbf16>
    %c0_2 = arith.constant 0 : index
    %c0_3 = arith.constant 0 : index
    %5 = vector.load %arg8[%c0_2, %c0_3] : memref<128x128xbf16, #tpu.memory_space<vmem>>, vector<128x128xbf16>
    %cst = arith.constant dense<0.000000e+00> : vector<8x128xf32>
    %6 = tpu.matmul %4, %5, %cst {dimension_numbers = #tpu.dot_dimension_numbers<[1], [0], [0], [1], [0, 0, 1, 1], [], []>} : vector<8x128xbf16>, vector<128x128xbf16>, vector<8x128xf32> -> vector<8x128xf32>
    %c0_4 = arith.constant 0 : index
    %c0_5 = arith.constant 0 : index
    %7 = vector.load %arg9[%c0_4, %c0_5] : memref<1x128xf32, #tpu.memory_space<vmem>>, vector<1x128xf32>
    %8 = vector.broadcast %7 : vector<1x128xf32> to vector<8x128xf32>
    %9 = arith.addf %6, %8 : vector<8x128xf32>
    %c0_6 = arith.constant 0 : index
    %c0_7 = arith.constant 0 : index
    %10 = vector.load %arg10[%c0_6, %c0_7] : memref<8x128xf32, #tpu.memory_space<vmem>>, vector<8x128xf32>
    tpu.vector_store %arg10[%c0_6, %c0_7], %9 {strides = array<i32>} : memref<8x128xf32, #tpu.memory_space<vmem>>, vector<8x128xf32>,
    %c0_8 = arith.constant 0 : index
    %c0_9 = arith.constant 0 : index
    %11 = vector.load %arg15[%c0_8, %c0_9] : memref<8x1xf32, #tpu.memory_space<vmem>>, vector<8x1xf32>
    %cst_10 = arith.constant dense<0xFF800000> : vector<8xf32>
    %12 = vector.multi_reduction <maximumf>, %9, %cst_10 [1] : vector<8x128xf32> to vector<8xf32>
    %13 = vector.shape_cast %12 : vector<8xf32> to vector<8x1xf32>
    %14 = arith.maximumf %11, %13 : vector<8x1xf32>
    %c0_11 = arith.constant 0 : index
    %c0_12 = arith.constant 0 : index
    %15 = vector.load %arg16[%c0_11, %c0_12] : memref<8x1xf32, #tpu.memory_space<vmem>>, vector<8x1xf32>
    %16 = arith.subf %11, %14 : vector<8x1xf32>
    %17 = math.exp %16 : vector<8x1xf32>
    %18 = arith.mulf %15, %17 : vector<8x1xf32>
    %19 = vector.broadcast %14 : vector<8x1xf32> to vector<8x128xf32>
    %20 = arith.subf %9, %19 : vector<8x128xf32>
    %21 = math.exp %20 : vector<8x128xf32>
    %cst_13 = arith.constant dense<0.000000e+00> : vector<8xf32>
    %22 = vector.multi_reduction <add>, %21, %cst_13 [1] : vector<8x128xf32> to vector<8xf32>
    %23 = vector.shape_cast %22 : vector<8xf32> to vector<8x1xf32>
    %24 = arith.addf %18, %23 : vector<8x1xf32>
    %c0_14 = arith.constant 0 : index
    %c0_15 = arith.constant 0 : index
    %25 = vector.load %arg16[%c0_14, %c0_15] : memref<8x1xf32, #tpu.memory_space<vmem>>, vector<8x1xf32>
    tpu.vector_store %arg16[%c0_14, %c0_15], %24 {strides = array<i32>} : memref<8x1xf32, #tpu.memory_space<vmem>>, vector<8x1xf32>,
    %c0_16 = arith.constant 0 : index
    %c0_17 = arith.constant 0 : index
    %26 = vector.load %arg15[%c0_16, %c0_17] : memref<8x1xf32, #tpu.memory_space<vmem>>, vector<8x1xf32>
    tpu.vector_store %arg15[%c0_16, %c0_17], %14 {strides = array<i32>} : memref<8x1xf32, #tpu.memory_space<vmem>>, vector<8x1xf32>,
    %c2_i32 = arith.constant 2 : i32
    %27 = arith.cmpi eq, %arg0, %c2_i32 : i32
    %28 = arith.extui %27 : i1 to i32
    %c0_i32_18 = arith.constant 0 : i32
    %29 = arith.cmpi ne, %28, %c0_i32_18 : i32
    scf.if %29 {
      %c0_19 = arith.constant 0 : index
      %c0_20 = arith.constant 0 : index
      %30 = vector.load %arg15[%c0_19, %c0_20] : memref<8x1xf32, #tpu.memory_space<vmem>>, vector<8x1xf32>
      %c0_21 = arith.constant 0 : index
      %c0_22 = arith.constant 0 : index
      %31 = vector.load %arg16[%c0_21, %c0_22] : memref<8x1xf32, #tpu.memory_space<vmem>>, vector<8x1xf32>
      %32 = math.log %31 : vector<8x1xf32>
      %33 = arith.addf %30, %32 : vector<8x1xf32>
      %c0_23 = arith.constant 0 : index
      %c0_24 = arith.constant 0 : index
      %34 = vector.load %arg12[%c0_23, %c0_24] : memref<8x1xf32, #tpu.memory_space<vmem>>, vector<8x1xf32>
      tpu.vector_store %arg12[%c0_23, %c0_24], %33 {strides = array<i32>} : memref<8x1xf32, #tpu.memory_space<vmem>>, vector<8x1xf32>,
    } else {
    }
    return
  }
  func.func @transform_1(%arg0: i32, %arg1: memref<8xi32, #tpu.memory_space<smem>>) -> (i32, i32, i32) {
    %c0_i32 = arith.constant 0 : i32
    %c0_i32_0 = arith.constant 0 : i32
    %c0_i32_1 = arith.constant 0 : i32
    %c0_i32_2 = arith.constant 0 : i32
    return %c0_i32, %c0_i32_0, %c0_i32_1 : i32, i32, i32
  }
  func.func @transform_2(%arg0: i32, %arg1: memref<8xi32, #tpu.memory_space<smem>>) -> (i32, i32, i32) {
    %c0_i32 = arith.constant 0 : i32
    %c0_i32_0 = arith.constant 0 : i32
    %c0_i32_1 = arith.constant 0 : i32
    %c0_i32_2 = arith.constant 0 : i32
    return %c0_i32, %c0_i32_0, %c0_i32_1 : i32, i32, i32
  }
  func.func @transform_3(%arg0: i32, %arg1: memref<8xi32, #tpu.memory_space<smem>>) -> (i32, i32, i32) {
    %c0_i32 = arith.constant 0 : i32
    %c0_i32_0 = arith.constant 0 : i32
    %c0_i32_1 = arith.constant 0 : i32
    %c0_i32_2 = arith.constant 0 : i32
    return %c0_i32, %c0_i32_0, %c0_i32_1 : i32, i32, i32
  }
  func.func @transform_4(%arg0: i32, %arg1: memref<8xi32, #tpu.memory_space<smem>>) -> (i32, i32, i32) {
    %c0_i32 = arith.constant 0 : i32
    %c0_i32_0 = arith.constant 0 : i32
    %c0_i32_1 = arith.constant 0 : i32
    %c0_i32_2 = arith.constant 0 : i32
    return %c0_i32, %c0_i32_0, %c0_i32_1 : i32, i32, i32
  }
  func.func @transform_5(%arg0: i32, %arg1: memref<8xi32, #tpu.memory_space<smem>>) -> (i32, i32, i32) {
    %c0_i32 = arith.constant 0 : i32
    %c0_i32_0 = arith.constant 0 : i32
    %c0_i32_1 = arith.constant 0 : i32
    %c0_i32_2 = arith.constant 0 : i32
    return %c0_i32, %c0_i32_0, %c0_i32_1 : i32, i32, i32
  }
  func.func @transform_6(%arg0: i32, %arg1: memref<8xi32, #tpu.memory_space<smem>>) -> (i32, i32) {
    %c0_i32 = arith.constant 0 : i32
    %c0_i32_0 = arith.constant 0 : i32
    return %c0_i32, %arg0 : i32, i32
  }
  func.func @transform_7(%arg0: i32, %arg1: memref<8xi32, #tpu.memory_space<smem>>) -> (i32, i32) {
    %c0_i32 = arith.constant 0 : i32
    %c0_i32_0 = arith.constant 0 : i32
    return %c0_i32, %arg0 : i32, i32
  }
  func.func @transform_8(%arg0: i32, %arg1: memref<8xi32, #tpu.memory_space<smem>>) -> (i32, i32) {
    %c0_i32 = arith.constant 0 : i32
    %c0_i32_0 = arith.constant 0 : i32
    return %c0_i32, %arg0 : i32, i32
  }
  func.func @transform_9(%arg0: i32, %arg1: memref<8xi32, #tpu.memory_space<smem>>) -> (i32, i32, i32) {
    %c0_i32 = arith.constant 0 : i32
    %c0_i32_0 = arith.constant 0 : i32
    %c0_i32_1 = arith.constant 0 : i32
    %c0_i32_2 = arith.constant 0 : i32
    return %c0_i32, %c0_i32_0, %c0_i32_1 : i32, i32, i32
  }
  func.func @transform_10(%arg0: i32, %arg1: memref<8xi32, #tpu.memory_space<smem>>) -> (i32, i32) {
    %c0_i32 = arith.constant 0 : i32
    %c0_i32_0 = arith.constant 0 : i32
    %c0_i32_1 = arith.constant 0 : i32
    return %c0_i32, %c0_i32_0 : i32, i32
  }
}

</mosaic_0001>

<bundles_post_ra>
// kernel: decoder_forward.1
= control target key start
LH: loop header
LB: loop body
LE: loop exit
PB: predicated region body
PF: predicated region fallthrough
CT: control target
= control target key end

     0   :  { %s3407_s0 = inlined_call_operand.vmem [shape: s32[8], index: 0, kind: input, shape index: {}]   ;;  %s3408_s1 = inlined_call_operand.hbm [shape: f32[300,128], index: 1, kind: input, shape index: {}]   ;;  %s3409_s2 = inlined_call_operand.vmem [shape: f32[2,8,128], index: 2, kind: input, shape index: {}]   ;;  %s3410_s3 = inlined_call_operand.hbm [shape: bf16[2,128,384], index: 3, kind: input, shape index: {}]   ;;  %s3411_s4 = inlined_call_operand.hbm [shape: bf16[2,128,384], index: 4, kind: input, shape index: {}]   ;;  %s3412_s5 = inlined_call_operand.vmem [shape: f32[2,1,384], index: 5, kind: input, shape index: {}]   ;;  %s3413_s6 = inlined_call_operand.vmem [shape: f32[2,1,384], index: 6, kind: input, shape index: {}]   ;;  %s3414_s7 = inlined_call_operand.hbm [shape: bf16[128,384], index: 7, kind: input, shape index: {}]   ;;  %s3415_s8 = inlined_call_operand.vmem [shape: f32[1,384], index: 8, kind: input, shape index: {}]   ;;  %s3416_s9 = inlined_call_operand.vmem [shape: f32[8,384], index: 9, kind: output, shape index: {0}]   ;;  %s3417_s10 = inlined_call_operand.vmem [shape: f32[2,8,128], index: 10, kind: output, shape index: {1}]   ;;  %s3418_s11 = inlined_call_operand.vmem [shape: f32[8,1], index: 11, kind: output, shape index: {2}]  }
   0x1   :  { %3426 = sst [smem:[#allocation46_spill]] %s3410_s3  ;;  %s17_s19 = sshll.u32 %s3407_s0, 4  ;;  %s18_s19 = int_to_ptr.vmem [resolvable:$true] %s17_s19 }
   0x2   :  { %3427 = sst [smem:[#allocation47_spill]] %s3417_s10  ;;  %s2512_s20 = scalar_lea.vmem %s18_s19, 16 }
   0x3   :  { %3428 = sst [smem:[#allocation48_spill]] %s3418_s11  ;;  %p2513_p0 = scmp.ne.s32.totalorder %s18_s19, %s2512_s20 }
   0x4   :  { %p2517_p1 = scmp.lt.s32.totalorder %s18_s19, %s18_s19  ;;  %p2518_p2 = scmp.lt.s32.totalorder %s2512_s20, %s2512_s20 }
   0x6   :  { %p2519_p3 = por %p2518_p2, %p2517_p1 }
   0x8   :  { %p2520_p4 = pnand %p2519_p3, %p2513_p0 }
   0xa   :  { %2523 = shalt.err (!%p2520_p4)  }
   0xb   :  { %s2864_s21 = smov [#allocation8]  }
   0xc   :  { %20 = dma.vmem_to_smem %s18_s19, 16, %s2864_s21, [#allocation7] }
   0xd   :  { %2818 = dma.done.wait [#allocation7], 16 }
   0xe   :  { %2819 = vsyncadd [#allocation7], 4294967280 }
   0xf   :  { %22 = sfence }
  0x10   :  { %23 = vsyncpa [#allocation10], 0 }
  0x11   :  { %24 = vsyncpa [#allocation12], 0  ;;  %s2950_s22 = smov 0   ;;  %s2952_s23 = smov 0  }
  0x12   :  { %s2954_s0 = smov 0   ;;  %s2956_s24 = smov 0  }
  0x13 LB: > { %s2969_s25 = sadd.s32 4294967295, %s2862_s24   ;;  %s2972_s26 = sadd.s32 1, %s2862_s24   ;;  %s2862_s24 = sphi %s2956_s24, %s3449_s24   ;;  %s2858_s0 = sphi %s2954_s0, %s3453_s0   ;;  %s2854_s23 = sphi %s2952_s23, %s3452_s23   ;;  %s2850_s22 = sphi %s2950_s22, %s3451_s22  }
  0x14   : > { %3429 = sst [smem:[#allocation44_spill]] %s2972_s26  ;;  %s139_s27 = ssub.s32 %s2862_s24, %s2972_s26 }
  0x15   : > { %s142_s28 = sadd.s32 1, %s2858_s0  ;;  %p140_p5 = scmp.eq.s32.totalorder %s139_s27, 0 }
  0x16   : > { %p149_p6 = scmp.ne.s32.totalorder %s2858_s0, %s2854_s23  ;;  %p150_p7 = scmp.eq.s32.totalorder %s2862_s24, 0 }
  0x17   : > { %p155_p8 = scmp.ne.s32.totalorder %s2854_s23, %s2850_s22  ;;  %p3419_p10 = scmp.eq.s32.totalorder %s2969_s25, 0 }
  0x18   : > { %s2982_s29 = scalar_select %p140_p5, %s2858_s0, %s142_s28  }
  0x19   : > { %p2984_p9 = por %p150_p7, %p149_p6  ;;  %p1959_p11 = scmp.ge.s32.totalorder %s2862_s24, 1 }
  0x1a   : > { %3430 = sst [smem:[#allocation45_spill]] %s2982_s29  ;;  %p260_p12 = scmp.lt.s32.totalorder %s2862_s24, 4 }
  0x1b   : > { %p2993_p13 = por %p3419_p10, %p155_p8  ;;  %s2865_s14 = smov [#allocation9]  }
  0x1c   : > { %p2998_p1 = pnand %p1959_p11, %p260_p12  ;;  %s275_s15 = sshll.u32 %s2865_s14, 4  ;;  %s276_s15 = int_to_ptr.vmem [resolvable:$true] %s275_s15 }
  0x1d   : > { %s3432_s12 = scalar_select %p2993_p13, 1, 0 }
  0x1e   : > { %s3433_s13 = scalar_select %p2998_p1, 1, 0 }
  0x1f   : > { %p2281_p2 = pneg %p2998_p1  ;;  %p2294_p4 = scmp.lt.s32.totalorder %s2862_s24, 3 }
  0x20   : > { %s3436_s3 = sld [smem:[#allocation46_spill]] }
  0x21   : > { %p3006_p3 = pnand %p2281_p2, %p3419_p10  ;;  %p3014_p5 = pnand %p2294_p4, %p2984_p9 }
  0x23   : > { %s3435_s18 = scalar_select %p3014_p5, 1, 0 }
  0x24   : > { %p2526_p7 = pneg %p3006_p3 }
  0x26   : > { %s2524_s21 = scalar_lea.hbm %s3436_s3, 6144 }
  0x27   : > { %p2525_p6 = scmp.ne.s32.totalorder %s3436_s3, %s2524_s21  ;;  %p2531_p9 = scmp.lt.u32.totalorder %s2524_s21, %s3436_s3 }
  0x29   : > { %p2527_p8 = pnand %p2526_p7, %p2525_p6 }
  0x2b   : > { %p2528_p11 = pneg %p2527_p8 }
  0x2d   : > { %p2533_p12 = pnand %p2531_p9, %p2528_p11 }
  0x2f   : > { %2536 = shalt.err (!%p2533_p12)
}
  0x30   : > { %s2537_s14 = scalar_lea.vmem %s276_s15, 6144  ;;  %p2545_p10 = scmp.lt.s32.totalorder %s276_s15, %s276_s15 }
  0x31   : > { %p2538_p2 = scmp.ne.s32.totalorder %s276_s15, %s2537_s14  ;;  %p2546_p13 = scmp.lt.s32.totalorder %s2537_s14, %s2537_s14 }
  0x33   : > { %p2540_p4 = pnand %p2538_p2, %p2526_p7  ;;  %p2547_p1 = por %p2546_p13, %p2545_p10 }
  0x35   : > { %p2541_p0 = pneg %p2540_p4 }
  0x37   : > { %p2548_p5 = pnand %p2547_p1, %p2541_p0 }
  0x39   : > { %2551 = shalt.err (!%p2548_p5)
}
  0x3a   : > { %s2866_s19 = smov 192   ;;  %s2867_s20 = smov 12  }
  0x3b   : > { %2284 = dma.hbm_to_vmem [thread:$0]  (!%p3006_p3), %s3436_s3, 6144, %s276_s15, [#allocation10], %s2866_s19, %s2866_s19, %s2867_s20  }
  0x3c   : > { %s2868_s27 = smov [#allocation11]   ;;  %s2552_s14 = scalar_lea.hbm %s3411_s4, 6144 }
  0x3d   : > { %s288_s28 = sshll.u32 %s2868_s27, 4  ;;  %p2553_p10 = scmp.ne.s32.totalorder %s3411_s4, %s2552_s14  ;;  %s289_s28 = int_to_ptr.vmem [resolvable:$true] %s288_s28 }
  0x3e   : > { %p2559_p1 = scmp.lt.u32.totalorder %s2552_s14, %s3411_s4 }
  0x3f   : > { %p2555_p13 = pnand %p2553_p10, %p2526_p7 }
  0x41   : > { %p2556_p0 = pneg %p2555_p13 }
  0x43   : > { %p2561_p5 = pnand %p2559_p1, %p2556_p0 }
  0x45   : > { %2564 = shalt.err (!%p2561_p5)
}
  0x46   : > { %s2565_s15 = scalar_lea.vmem %s289_s28, 6144  ;;  %p2573_p9 = scmp.lt.s32.totalorder %s289_s28, %s289_s28 }
  0x47   : > { %p2566_p6 = scmp.ne.s32.totalorder %s289_s28, %s2565_s15  ;;  %p2574_p12 = scmp.lt.s32.totalorder %s2565_s15, %s2565_s15 }
  0x49   : > { %p2568_p8 = pnand %p2566_p6, %p2526_p7  ;;  %p2575_p2 = por %p2574_p12, %p2573_p9 }
  0x4b   : > { %p2569_p11 = pneg %p2568_p8 }
  0x4d   : > { %p2576_p4 = pnand %p2575_p2, %p2569_p11 }
  0x4f   : > { %2579 = shalt.err (!%p2576_p4)
}
  0x50   : > { %2287 = dma.hbm_to_vmem [thread:$0]  (!%p3006_p3), %s3411_s4, 6144, %s289_s28, [#allocation12], %s2866_s19, %s2866_s19, %s2867_s20  }
  0x51   : > { %s310_s26 = sand.u32 1, %s2858_s0   ;;  %s1964_s29 = sshll.u32 %s2862_s24, 6 }
  0x52   : > { %s1963_s17 = sshll.u32 %s310_s26, 6  ;;  %s3069_s27 = scalar_lea.hbm %s3414_s7, %s1964_s29 }
  0x53   : > { %s312_s16 = scalar_lea.vmem [#allocation13], %s1963_s17  ;;  %s3437_s14 = sand.u32 1, %s2862_s24  }
  0x54   : > { %s318_s30 = sshll.u32 %s312_s16, 4  ;;  %s3075_s15 = scalar_lea.sflag [#allocation10], %s3437_s14  ;;  %s3071_s30 = int_to_ptr.vmem [resolvable:$true] %s318_s30 }
  0x55   : > { %s2580_s20 = scalar_lea.hbm %s3069_s27, 1024  ;;  %p3438_p7 = scmp.ne.s32.totalorder %s3435_s18, 0 }
  0x56   : > { %p2581_p3 = scmp.ne.s32.totalorder %s3069_s27, %s2580_s20  ;;  %s2585_s11 = scalar_lea.hbm %s3414_s7, 3072 }
  0x57   : > { %p2582_p10 = pneg %p3438_p7  ;;  %p2586_p1 = scmp.lt.u32.totalorder %s3069_s27, %s3414_s7 }
  0x58   : > { %p2587_p5 = scmp.lt.u32.totalorder %s2585_s11, %s2580_s20  ;;  %p2589_p8 = scmp.lt.u32.totalorder %s2580_s20, %s3069_s27 }
  0x59   : > { %p2583_p13 = pnand %p2582_p10, %p2581_p3 }
  0x5a   : > { %p2588_p6 = por %p2587_p5, %p2586_p1 }
  0x5b   : > { %p2584_p0 = pneg %p2583_p13 }
  0x5c   : > { %p2590_p11 = por %p2589_p8, %p2588_p6 }
  0x5e   : > { %p2591_p9 = pnand %p2590_p11, %p2584_p0 }
  0x60   : > { %2594 = shalt.err (!%p2591_p9)
}
  0x61   : > { %s2595_s24 = scalar_lea.vmem %s3071_s30, 1024  ;;  %s2869_s17 = smov [#allocation13]  }
  0x62   : > { %p2596_p12 = scmp.ne.s32.totalorder %s3071_s30, %s2595_s24  ;;  %s2600_s21 = sshll.u32 %s2869_s17, 4  ;;  %s2601_s21 = int_to_ptr.vmem [resolvable:$false] %s2600_s21 }
  0x63   : > { %s2602_s22 = scalar_lea.vmem %s2601_s21, 2048  ;;  %p2603_p3 = scmp.lt.s32.totalorder %s3071_s30, %s2601_s21 }
  0x64   : > { %p2598_p2 = pnand %p2596_p12, %p2582_p10  ;;  %p2604_p13 = scmp.lt.s32.totalorder %s2602_s22, %s2595_s24 }
  0x66   : > { %p2599_p4 = pneg %p2598_p2  ;;  %p2605_p1 = por %p2604_p13, %p2603_p3 }
  0x68   : > { %p2606_p5 = pnand %p2605_p1, %p2599_p4 }
  0x6a   : > { %2609 = shalt.err (!%p2606_p5)
}
  0x6b   : > { %s2870_s16 = smov 64   ;;  %s2871_s14 = smov 4  }
  0x6c   : > { %2291 = dma.hbm_to_vmem [thread:$0]  (!%p3438_p7), %s3069_s27, 1024, %s3071_s30, %s3075_s15, %s2866_s19, %s2870_s16, %s2871_s14  }
  0x6d   : > { %p3439_p10 = scmp.ne.s32.totalorder %s3433_s13, 0 }
  0x6e   : > { %p3440_p0 = scmp.eq.s32.totalorder (!%p3439_p10), %s2969_s25, 0 }
  0x6f   : > { %336 = sbr.rel (%p3439_p10) target bundleno = 1732 (0x6c4), region = 48 }
  0x76   : > { %2821 = dma.done.wait (%p3440_p0), [#allocation10], 6144   ;;  %p3441_p6 = pmov %p3440_p0 }
  0x77   : > { %p3442_p8 = pmov %p3440_p0 }
  0x78   : > { %2823 = vsyncadd (%p3441_p6), [#allocation10], 4294961152 }
  0x79   : > { %2825 = dma.done.wait (%p3442_p8), [#allocation12], 6144   ;;  %p3443_p11 = pmov %p3440_p0 }
  0x7a   : > { %s346_s18 = sand.u32 1, %s2969_s25   ;;  %s348_s19 = sand.u32 1, %s2854_s23  }
  0x7b   : > { %2827 = vsyncadd (%p3443_p11), [#allocation12], 4294961152  ;;  %s1968_s27 = sshll.u32 %s348_s19, 6  ;;  %s347_s13 = scalar_lea.sflag [#allocation10], %s346_s18 }
  0x7c   : > { %s3116_s30 = scalar_lea.vmem [#allocation13], %s1968_s27  ;;  %p3444_p7 = scmp.ne.s32.totalorder %s3432_s12, 0 }
  0x7e   : > { %2829 = dma.done.wait (%p3444_p7), %s347_s13, 1024  }
  0x7f   : > { %2831 = vsyncadd (%p3444_p7), %s347_s13, 4294966272  ;;  %p387_p9 = scmp.lt.s32.totalorder %s2969_s25, 2  ;;  %p3445_p12 = scmp.ne.s32.totalorder %s2969_s25, 0 }
  0x80   : > { %v2872_v0 = vmov (!%p3445_p12), 0.0   ;;  %v2351_v1 = vld [vmem:[#allocation11 + $0x8] ss:$12 sps:$4 sm:$0xff] (!%p3445_p12)   ;;  %vm2873_vm0 = vmmov (!%p3445_p12), 0   ;;  %v2352_v2 = vld [vmem:[#allocation11 + $0x20] ss:$12 sps:$4 sm:$0xff] (!%p3445_p12)   ;;  %v561_v11 = vlaneseq (!%p3445_p12) }
  0x81   : > { %s3124_s15 = scalar_select %p387_p9, %s2969_s25, 2 }
  0x82   : > { %398 = sbr.rel (%p3445_p12) target bundleno = 1030 (0x406), region = 64  ;;  %2155 = vmatprep.subr.bf16.mxu1 (!%p3445_p12), %v2872_v0  ;;  %2171 = vmatprep.mubr.msk.bf16.mxu1 (!%p3445_p12), %vm2873_vm0, %v2872_v0  ;;  %v2353_v3 = vld [vmem:[#allocation11 + $0x38] ss:$12 sps:$4 sm:$0xff] (!%p3445_p12)   ;;  %s399_s12 = sld [smem:[#allocation8]] (!%p3445_p12)  ;;  %v2361_v5 = vld [vmem:[#allocation11] ss:$12 sps:$4 sm:$0xff] (!%p3445_p12)  }
  0x83   : > { %s1969_s11 = sshll.u32 %s3124_s15, 3  ;;  %2156 = vmatpush3.bf16.msra.mxu1 (!%p3445_p12), %v2351_v1  ;;  %v2359_v4 = vld [vmem:[#allocation11 + $0x4] ss:$12 sps:$4 sm:$0xff] (!%p3445_p12)   ;;  %v2362_v6 = vld [vmem:[#allocation11 + $0x1c] ss:$12 sps:$4 sm:$0xff] (!%p3445_p12)   ;;  %s2874_s17 = smov (!%p3445_p12), [#allocation2]  }
  0x84   : > { %s3134_s24 = scalar_lea.vmem %s3416_s9, %s1969_s11  ;;  %2157 = vmatprep.subr.bf16.mxu1 (!%p3445_p12), %v2872_v0  ;;  %s409_s21 = sshll.u32 (!%p3445_p12), %s2874_s17, 4  ;;  %v2354_v7 = vld [vmem:[#allocation11 + $0x50] ss:$12 sps:$4 sm:$0xff] (!%p3445_p12)   ;;  %704 = vmatprep.subr.bf16.mxu0 (!%p3445_p12), %v2359_v4  ;;  %v2364_v8 = vld [vmem:[#allocation11 + $0x18] ss:$12 sps:$4 sm:$0xff] (!%p3445_p12)   ;;  %s3146_s21 = int_to_ptr.vmem [resolvable:$true] %s409_s21 }
  0x85   : > { %s3143_s22 = sld [smem:[#allocation8 + $0x1]] (!%p3445_p12)  ;;  %705 = vmatpush1.bf16.msra.mxu0 (!%p3445_p12), %v2361_v5  ;;  %s2875_s16 = smov (!%p3445_p12), [#allocation2 + $0x1]   ;;  %v2365_v9 = vld [vmem:[#allocation11 + $0x34] ss:$12 sps:$4 sm:$0xff] (!%p3445_p12)   ;;  %v2367_v12 = vld [vmem:[#allocation11 + $0x30] ss:$12 sps:$4 sm:$0xff] (!%p3445_p12)  }
  0x86   : > { %s425_s14 = sshll.u32 (!%p3445_p12), %s2875_s16, 4  ;;  %706 = vmatprep.subr.bf16.mxu0 (!%p3445_p12), %v2362_v6  ;;  %s2876_s19 = smov (!%p3445_p12), [#allocation2 + $0x2]   ;;  %v2355_v10 = vld [vmem:[#allocation11 + $0x68] ss:$12 sps:$4 sm:$0xff] (!%p3445_p12)   ;;  %v2368_v13 = vld [vmem:[#allocation11 + $0x4c] ss:$12 sps:$4 sm:$0xff] (!%p3445_p12)   ;;  %s3148_s14 = int_to_ptr.vmem [resolvable:$true] %s425_s14 }
  0x87   : > { %2158 = vmatpush3.bf16.msra.mxu1 (!%p3445_p12), %v2352_v2  ;;  %s441_s27 = sshll.u32 (!%p3445_p12), %s2876_s19, 4  ;;  %s3153_s11 = sld [smem:[#allocation8 + $0x2]] (!%p3445_p12)  ;;  %s3156_s27 = int_to_ptr.vmem [resolvable:$true] %s441_s27 }
  0x88   : > { %2159 = vmatprep.subr.bf16.mxu1 (!%p3445_p12), %v2872_v0  ;;  %s1971_s18 = sshll.u32 (!%p3445_p12), %s399_s12, 4  ;;  %s3161_s17 = scalar_lea.hbm (!%p3445_p12), %s3408_s1, 4864 }
  0x89   : > { %s401_s28 = scalar_lea.hbm %s3408_s1, %s1971_s18  ;;  %707 = vmatpush1.bf16.msra.mxu0 %v2364_v8 }
  0x8a   : > { %708 = vmatprep.subr.bf16.mxu0 %v2365_v9  ;;  %s2610_s26 = scalar_lea.hbm %s401_s28, 16  ;;  %p2613_p4 = scmp.lt.u32.totalorder %s401_s28, %s3408_s1 }
  0x8b   : > { %2160 = vmatpush3.bf16.msra.mxu1 %v2353_v3  ;;  %p2611_p2 = scmp.ne.s32.totalorder %s401_s28, %s2610_s26  ;;  %p2614_p3 = scmp.lt.u32.totalorder %s3161_s17, %s2610_s26 }
  0x8c   : > { %2161 = vmatprep.subr.bf16.mxu1 %v2872_v0  ;;  %p2616_p1 = scmp.lt.u32.totalorder %s2610_s26, %s401_s28 }
  0x8d   : > { %p2615_p13 = por %p2614_p3, %p2613_p4 }
  0x8f   : > { %2162 = vmatpush3.bf16.msra.mxu1 %v2354_v7  ;;  %p2617_p5 = por %p2616_p1, %p2615_p13 }
  0x90   : > { %2163 = vmatprep.subr.bf16.mxu1 %v2872_v0 }
  0x91   : > { %p2618_p10 = pnand %p2617_p5, %p2611_p2 }
  0x93   : > { %2621 = shalt.err (!%p2618_p10)  }
  0x94   : > { %s2622_s19 = scalar_lea.vmem %s3146_s21, 16  ;;  %s3170_s13 = scalar_lea.vmem %s3146_s21, 128 }
  0x95   : > { %p2623_p0 = scmp.ne.s32.totalorder %s3146_s21, %s2622_s19  ;;  %p2627_p6 = scmp.lt.s32.totalorder %s3146_s21, %s3146_s21 }
  0x96   : > { %p2628_p8 = scmp.lt.s32.totalorder %s3170_s13, %s2622_s19 }
  0x98   : > { %p2629_p11 = por %p2628_p8, %p2627_p6 }
  0x9a   : > { %p2630_p7 = pnand %p2629_p11, %p2623_p0 }
  0x9c   : > { %2633 = shalt.err (!%p2630_p7)  }
  0x9d   : > { %412 = dma.hbm_to_vmem [thread:$0]  %s401_s28, 16, %s3146_s21, [#allocation6]  ;;  %2164 = vmatpush3.bf16.msra.mxu1 %v2355_v10  ;;  %v2356_v14 = vld [vmem:[#allocation11 + $0x80] ss:$12 sps:$4 sm:$0xff]   ;;  %v3182_v15 = vshrl.u32 %v561_v11, 7  ;;  %709 = vmatpush1.bf16.msra.mxu0 %v2367_v12 }
  0x9e   : > { %s1973_s20 = sshll.u32 %s3143_s22, 4  ;;  %s3177_s26 = sld [smem:[#allocation8 + $0x3]]  ;;  %2165 = vmatprep.subr.bf16.mxu1 %v2872_v0  ;;  %v2370_v16 = vld [vmem:[#allocation11 + $0x48] ss:$12 sps:$4 sm:$0xff]  }
  0x9f   : > { %s415_s16 = scalar_lea.hbm %s3408_s1, %s1973_s20  ;;  %s2877_s18 = smov [#allocation2 + $0x3]  }
  0xa0   : > { %s457_s10 = sshll.u32 %s2877_s18, 4  ;;  %s2634_s19 = scalar_lea.hbm %s415_s16, 16  ;;  %s3196_s10 = int_to_ptr.vmem [resolvable:$true] %s457_s10 }
  0xa1   : > { %p2635_p9 = scmp.ne.s32.totalorder %s415_s16, %s2634_s19  ;;  %p2637_p12 = scmp.lt.u32.totalorder %s415_s16, %s3408_s1 }
  0xa2   : > { %p2638_p2 = scmp.lt.u32.totalorder %s3161_s17, %s2634_s19  ;;  %p2640_p3 = scmp.lt.u32.totalorder %s2634_s19, %s415_s16 }
  0xa4   : > { %p2639_p4 = por %p2638_p2, %p2637_p12 }
  0xa6   : > { %p2641_p13 = por %p2640_p3, %p2639_p4 }
  0xa8   : > { %p2642_p1 = pnand %p2641_p13, %p2635_p9 }
  0xaa   : > { %2645 = shalt.err (!%p2642_p1)  }
  0xab   : > { %s2646_s20 = scalar_lea.vmem %s3148_s14, 16  ;;  %p2651_p10 = scmp.lt.s32.totalorder %s3148_s14, %s3146_s21 }
  0xac   : > { %p2647_p5 = scmp.ne.s32.totalorder %s3148_s14, %s2646_s20  ;;  %p2652_p0 = scmp.lt.s32.totalorder %s3170_s13, %s2646_s20 }
  0xae   : > { %p2653_p6 = por %p2652_p0, %p2651_p10 }
  0xb0   : > { %p2654_p8 = pnand %p2653_p6, %p2647_p5 }
  0xb2   : > { %2657 = shalt.err (!%p2654_p8)  }
  0xb3   : > { %428 = dma.hbm_to_vmem [thread:$0]  %s415_s16, 16, %s3148_s14, [#allocation6 + $0x1]  ;;  %710 = vmatprep.subr.bf16.mxu0 %v2368_v13  ;;  %v2371_v17 = vld [vmem:[#allocation11 + $0x64] ss:$12 sps:$4 sm:$0xff]   ;;  %v3199_v18 = vsub.s32 0, %v3182_v15  ;;  %v3202_v19 = vsub.s32 1, %v3182_v15  ;;  %2166 = vmatpush3.bf16.msra.mxu1 %v2356_v14 }
  0xb4   : > { %s1975_s29 = sshll.u32 %s3153_s11, 4  ;;  %s3207_s28 = sld [smem:[#allocation8 + $0x4]]  ;;  %v3212_v20 = vld [vmem:[%s3413_s6] sm:$0x7]  ;;  %v2357_v21 = vld [vmem:[#allocation11 + $0x98] ss:$12 sps:$4 sm:$0xff]  }
  0xb5   : > { %s431_s19 = scalar_lea.hbm %s3408_s1, %s1975_s29 }
  0xb6   : > { %s2658_s14 = scalar_lea.hbm %s431_s19, 16  ;;  %p2661_p7 = scmp.lt.u32.totalorder %s431_s19, %s3408_s1 }
  0xb7   : > { %p2659_p11 = scmp.ne.s32.totalorder %s431_s19, %s2658_s14  ;;  %p2662_p9 = scmp.lt.u32.totalorder %s3161_s17, %s2658_s14 }
  0xb8   : > { %p2664_p2 = scmp.lt.u32.totalorder %s2658_s14, %s431_s19 }
  0xb9   : > { %p2663_p12 = por %p2662_p9, %p2661_p7 }
  0xbb   : > { %p2665_p4 = por %p2664_p2, %p2663_p12 }
  0xbd   : > { %p2666_p3 = pnand %p2665_p4, %p2659_p11 }
  0xbf   : > { %2669 = shalt.err (!%p2666_p3)  }
  0xc0   : > { %s2670_s29 = scalar_lea.vmem %s3156_s27, 16  ;;  %p2675_p1 = scmp.lt.s32.totalorder %s3156_s27, %s3146_s21 }
  0xc1   : > { %p2671_p13 = scmp.ne.s32.totalorder %s3156_s27, %s2670_s29  ;;  %p2676_p5 = scmp.lt.s32.totalorder %s3170_s13, %s2670_s29 }
  0xc3   : > { %p2677_p10 = por %p2676_p5, %p2675_p1 }
  0xc5   : > { %p2678_p0 = pnand %p2677_p10, %p2671_p13 }
  0xc7   : > { %2681 = shalt.err (!%p2678_p0)  }
  0xc8   : > { %444 = dma.hbm_to_vmem [thread:$0]  %s431_s19, 16, %s3156_s27, [#allocation6 + $0x2]  ;;  %v564_v22 = vrot.slane %v3212_v20, %v3199_v18  ;;  %v568_v23 = vrot.slane %v3212_v20, %v3202_v19  ;;  %2167 = vmatprep.subr.bf16.mxu1 %v2872_v0  ;;  %711 = vmatpush1.bf16.msra.mxu0 %v2370_v16  ;;  %v2373_v24 = vld [vmem:[#allocation11 + $0x60] ss:$12 sps:$4 sm:$0xff]   ;;  %v2374_v25 = vld [vmem:[#allocation11 + $0x7c] ss:$12 sps:$4 sm:$0xff]  }
  0xc9   : > { %s1977_s12 = sshll.u32 %s3177_s26, 4  ;;  %712 = vmatprep.subr.bf16.mxu0 %v2371_v17  ;;  %s2878_s14 = smov [#allocation2 + $0x4]  }
  0xca   : > { %s447_s20 = scalar_lea.hbm %s3408_s1, %s1977_s12  ;;  %s473_s11 = sshll.u32 %s2878_s14, 4  ;;  %s474_s11 = int_to_ptr.vmem [resolvable:$true] %s473_s11 }
  0xcb   : > { %s2682_s27 = scalar_lea.hbm %s447_s20, 16  ;;  %p2685_p8 = scmp.lt.u32.totalorder %s447_s20, %s3408_s1 }
  0xcc   : > { %p2683_p6 = scmp.ne.s32.totalorder %s447_s20, %s2682_s27  ;;  %p2686_p11 = scmp.lt.u32.totalorder %s3161_s17, %s2682_s27 }
  0xcd   : > { %p2688_p9 = scmp.lt.u32.totalorder %s2682_s27, %s447_s20 }
  0xce   : > { %p2687_p7 = por %p2686_p11, %p2685_p8 }
  0xd0   : > { %p2689_p12 = por %p2688_p9, %p2687_p7 }
  0xd2   : > { %p2690_p2 = pnand %p2689_p12, %p2683_p6 }
  0xd4   : > { %2693 = shalt.err (!%p2690_p2)  }
  0xd5   : > { %s2694_s26 = scalar_lea.vmem %s3196_s10, 16  ;;  %p2699_p3 = scmp.lt.s32.totalorder %s3196_s10, %s3146_s21 }
  0xd6   : > { %p2695_p4 = scmp.ne.s32.totalorder %s3196_s10, %s2694_s26  ;;  %p2700_p13 = scmp.lt.s32.totalorder %s3170_s13, %s2694_s26 }
  0xd8   : > { %p2701_p1 = por %p2700_p13, %p2699_p3 }
  0xda   : > { %p2702_p5 = pnand %p2701_p1, %p2695_p4 }
  0xdc   : > { %2705 = shalt.err (!%p2702_p5)  }
  0xdd   : > { %460 = dma.hbm_to_vmem [thread:$0]  %s447_s20, 16, %s3196_s10, [#allocation6 + $0x3]  ;;  %2168 = vmatpush3.bf16.msra.mxu1 %v2357_v21  ;;  %v2358_v26 = vld [vmem:[#allocation11 + $0xb0] ss:$12 sps:$4 sm:$0xff]   ;;  %v3246_v27 = vld [vmem:[%s3409_s2] sm:$0xff]  ;;  %713 = vmatpush1.bf16.msra.mxu0 %v2373_v24 }
  0xde   : > { %2169 = vmatprep.subr.bf16.mxu1 %v2872_v0  ;;  %v2376_v28 = vld [vmem:[#allocation11 + $0x78] ss:$12 sps:$4 sm:$0xff]   ;;  %s1979_s18 = sshll.u32 %s3207_s28, 4  ;;  %714 = vmatprep.subr.bf16.mxu0 %v2374_v25  ;;  %v551_v29 = vld [vmem:[#allocation11 + $0x90] sm:$0xff]  ;;  %v553_v30 = vld [vmem:[#allocation11 + $0x9c] sm:$0xff]  ;;  %v526_v32 = vpack.c.bf16 %v3246_v27, %v3246_v27 }
  0xdf   : > { %v2377_v31 = vld [vmem:[#allocation11 + $0x94] ss:$12 sps:$4 sm:$0xff]   ;;  %s463_s20 = scalar_lea.hbm %s3408_s1, %s1979_s18 }
  0xe0   : > { %s2706_s14 = scalar_lea.hbm %s463_s20, 16  ;;  %p2709_p0 = scmp.lt.u32.totalorder %s463_s20, %s3408_s1 }
  0xe1   : > { %p2707_p10 = scmp.ne.s32.totalorder %s463_s20, %s2706_s14  ;;  %p2710_p6 = scmp.lt.u32.totalorder %s3161_s17, %s2706_s14 }
  0xe2   : > { %p2712_p11 = scmp.lt.u32.totalorder %s2706_s14, %s463_s20 }
  0xe3   : > { %p2711_p8 = por %p2710_p6, %p2709_p0 }
  0xe5   : > { %p2713_p7 = por %p2712_p11, %p2711_p8 }
  0xe7   : > { %p2714_p9 = pnand %p2713_p7, %p2707_p10 }
  0xe9   : > { %2717 = shalt.err (!%p2714_p9)  }
  0xea   : > { %s2718_s28 = scalar_lea.vmem %s474_s11, 16  ;;  %p2723_p2 = scmp.lt.s32.totalorder %s474_s11, %s3146_s21 }
  0xeb   : > { %p2719_p12 = scmp.ne.s32.totalorder %s474_s11, %s2718_s28  ;;  %p2724_p4 = scmp.lt.s32.totalorder %s3170_s13, %s2718_s28 }
  0xed   : > { %p2725_p3 = por %p2724_p4, %p2723_p2 }
  0xef   : > { %p2726_p13 = pnand %p2725_p3, %p2719_p12 }
  0xf1   : > { %2729 = shalt.err (!%p2726_p13)  }
  0xf2   : > { %476 = dma.hbm_to_vmem [thread:$0]  %s463_s20, 16, %s474_s11, [#allocation6 + $0x4]  ;;  %2170 = vmatpush3.bf16.msra.mxu1 %v2358_v26  ;;  %715 = vmatpush1.bf16.msra.mxu0 %v2376_v28  ;;  %v2004_v33 = vcombine.low %v551_v29, %v553_v30  ;;  %v555_v34 = vld [vmem:[#allocation11 + $0xa8] sm:$0xff]  ;;  %v557_v35 = vld [vmem:[#allocation11 + $0xb4] sm:$0xff] }
  0xf3   : > { %716 = vmatprep.subr.bf16.mxu0 %v2377_v31  ;;  %v2379_v36 = vld [vmem:[#allocation11 + $0xac] ss:$12 sps:$4 sm:$0xff]   ;;  %v2007_v37 = vcombine.low %v555_v34, %v557_v35  ;;  %s1980_s16 = sld [smem:[#allocation8 + $0x5]]  ;;  %s1982_s26 = sld [smem:[#allocation8 + $0x6]] }
  0xf4   : > { %s3261_s29 = sld [smem:[#allocation8 + $0x7]]  ;;  %s2879_s18 = smov [#allocation2 + $0x5]  }
  0xf5   : > { %2172 = vmatmul.mubr.bf16.vlgmr.msra.gmra.mrb[0].mxu1 %v526_v32  ;;  %s489_s11 = sshll.u32 %s2879_s18, 4  ;;  %s490_s11 = int_to_ptr.vmem [resolvable:$true] %s489_s11 }
  0xf6   : > { %717 = vmatpush1.bf16.msra.mxu0 %v2004_v33 }
  0xf7   : > { %718 = vmatprep.subr.bf16.mxu0 %v2379_v36 }
  0xf9   : > { %s1981_s12 = sshll.u32 %s1980_s16, 4 }
  0xfa   : > { %719 = vmatpush1.bf16.msra.mxu0 %v2007_v37  ;;  %s479_s20 = scalar_lea.hbm %s3408_s1, %s1981_s12 }
  0xfb   : > { %s2730_s14 = scalar_lea.hbm %s479_s20, 16  ;;  %p2733_p5 = scmp.lt.u32.totalorder %s479_s20, %s3408_s1 }
  0xfc   : > { %p2731_p1 = scmp.ne.s32.totalorder %s479_s20, %s2730_s14  ;;  %p2734_p10 = scmp.lt.u32.totalorder %s3161_s17, %s2730_s14 }
  0xfd   : > { %p2736_p6 = scmp.lt.u32.totalorder %s2730_s14, %s479_s20 }
  0xfe   : > { %p2735_p0 = por %p2734_p10, %p2733_p5 }
 0x100   : > { %p2737_p8 = por %p2736_p6, %p2735_p0 }
 0x102   : > { %p2738_p11 = pnand %p2737_p8, %p2731_p1 }
 0x104   : > { %2741 = shalt.err (!%p2738_p11)  }
 0x105   : > { %s2742_s28 = scalar_lea.vmem %s490_s11, 16  ;;  %p2747_p9 = scmp.lt.s32.totalorder %s490_s11, %s3146_s21 }
 0x106   : > { %p2743_p7 = scmp.ne.s32.totalorder %s490_s11, %s2742_s28  ;;  %p2748_p12 = scmp.lt.s32.totalorder %s3170_s13, %s2742_s28 }
 0x108   : > { %p2749_p2 = por %p2748_p12, %p2747_p9 }
 0x10a   : > { %p2750_p4 = pnand %p2749_p2, %p2743_p7 }
 0x10c   : > { %2753 = shalt.err (!%p2750_p4)  }
 0x10d   : > { %492 = dma.hbm_to_vmem [thread:$0]  %s479_s20, 16, %s490_s11, [#allocation6 + $0x5]  ;;  %v2880_v38 = vmov 0  }
 0x10e   : > { %s1983_s16 = sshll.u32 %s1982_s26, 4  ;;  %736 = vmatprep.mubr.bf16.mxu0 %v2880_v38  ;;  %s2881_s10 = smov [#allocation2 + $0x6]  }
 0x10f   : > { %s495_s22 = scalar_lea.hbm %s3408_s1, %s1983_s16  ;;  %s505_s14 = sshll.u32 %s2881_s10, 4  ;;  %737 = vmatmul.mubr.bf16.vlgmr.msra.gmra.mrb[0].mxu0 %v526_v32  ;;  %s506_s14 = int_to_ptr.vmem [resolvable:$true] %s505_s14 }
 0x110   : > { %s1985_s27 = sshll.u32 %s3261_s29, 4  ;;  %s2754_s19 = scalar_lea.hbm %s495_s22, 16 }
 0x111   : > { %p2755_p3 = scmp.ne.s32.totalorder %s495_s22, %s2754_s19  ;;  %p2757_p13 = scmp.lt.u32.totalorder %s495_s22, %s3408_s1 }
 0x112   : > { %p2758_p1 = scmp.lt.u32.totalorder %s3161_s17, %s2754_s19  ;;  %p2760_p10 = scmp.lt.u32.totalorder %s2754_s19, %s495_s22 }
 0x114   : > { %p2759_p5 = por %p2758_p1, %p2757_p13 }
 0x116   : > { %p2761_p0 = por %p2760_p10, %p2759_p5 }
 0x118   : > { %p2762_p6 = pnand %p2761_p0, %p2755_p3 }
 0x11a   : > { %2765 = shalt.err (!%p2762_p6)  }
 0x11b   : > { %s2766_s26 = scalar_lea.vmem %s506_s14, 16  ;;  %p2771_p11 = scmp.lt.s32.totalorder %s506_s14, %s3146_s21 }
 0x11c   : > { %p2767_p8 = scmp.ne.s32.totalorder %s506_s14, %s2766_s26  ;;  %p2772_p7 = scmp.lt.s32.totalorder %s3170_s13, %s2766_s26 }
 0x11e   : > { %p2773_p9 = por %p2772_p7, %p2771_p11 }
 0x120   : > { %p2774_p12 = pnand %p2773_p9, %p2767_p8 }
 0x122   : > { %2777 = shalt.err (!%p2774_p12)  }
 0x123   : > { %508 = dma.hbm_to_vmem [thread:$0]  %s495_s22, 16, %s506_s14, [#allocation6 + $0x6] }
 0x124   : > { %s511_s3 = scalar_lea.hbm %s3408_s1, %s1985_s27  ;;  %s2882_s20 = smov [#allocation2 + $0x7]  }
 0x125   : > { %s521_s16 = sshll.u32 %s2882_s20, 4  ;;  %s2778_s12 = scalar_lea.hbm %s511_s3, 16  ;;  %s522_s16 = int_to_ptr.vmem [resolvable:$true] %s521_s16 }
 0x126   : > { %p2779_p2 = scmp.ne.s32.totalorder %s511_s3, %s2778_s12  ;;  %p2781_p4 = scmp.lt.u32.totalorder %s511_s3, %s3408_s1 }
 0x127   : > { %p2782_p3 = scmp.lt.u32.totalorder %s3161_s17, %s2778_s12  ;;  %p2784_p1 = scmp.lt.u32.totalorder %s2778_s12, %s511_s3 }
 0x129   : > { %p2783_p13 = por %p2782_p3, %p2781_p4 }
 0x12b   : > { %p2785_p5 = por %p2784_p1, %p2783_p13 }
 0x12d   : > { %p2786_p10 = pnand %p2785_p5, %p2779_p2 }
 0x12f   : > { %2789 = shalt.err (!%p2786_p10)  }
 0x130   : > { %s2790_s22 = scalar_lea.vmem %s522_s16, 16  ;;  %p2795_p6 = scmp.lt.s32.totalorder %s522_s16, %s3146_s21 }
 0x131   : > { %p2791_p0 = scmp.ne.s32.totalorder %s522_s16, %s2790_s22  ;;  %p2796_p8 = scmp.lt.s32.totalorder %s3170_s13, %s2790_s22 }
 0x133   : > { %p2797_p11 = por %p2796_p8, %p2795_p6 }
 0x135   : > { %p2798_p7 = pnand %p2797_p11, %p2791_p0 }
 0x137   : > { %2801 = shalt.err (!%p2798_p7)  }
 0x138   : > { %524 = dma.hbm_to_vmem [thread:$0]  %s511_s3, 16, %s522_s16, [#allocation6 + $0x7]  ;;  %v3293_v39 = vsub.s32 2, %v3182_v15 }
 0x13a   : > { %v572_v40 = vrot.slane %v3212_v20, %v3293_v39 }
 0x1c8   : > { %v779_v41 = vpop.f32.mrb[0].mxu1 }
 0x1c9   : > { %v3297_v42 = vadd.f32 %v779_v41, %v572_v40  ;;  %v2173_v43 = vpop.f32.mrb[1].mxu1 }
 0x1ca   : > { %v782_v44 = vpop.f32.mrb[2].mxu1 }
 0x1cb   : > { %v2174_v45 = vpop.f32.mrb[3].mxu1 }
 0x1cc   : > { %2832 = dma.done.wait [#allocation6], 16 }
 0x1cd   : > { %2833 = vsyncadd [#allocation6], 4294967280 }
 0x1ce   : > { %2834 = dma.done.wait [#allocation6 + $0x1], 16 }
 0x1cf   : > { %2835 = vsyncadd [#allocation6 + $0x1], 4294967280 }
 0x1d0   : > { %2836 = dma.done.wait [#allocation6 + $0x2], 16 }
 0x1d1   : > { %2837 = vsyncadd [#allocation6 + $0x2], 4294967280 }
 0x1d2   : > { %2838 = dma.done.wait [#allocation6 + $0x3], 16 }
 0x1d3   : > { %2839 = vsyncadd [#allocation6 + $0x3], 4294967280 }
 0x1d4   : > { %2840 = dma.done.wait [#allocation6 + $0x4], 16 }
 0x1d5   : > { %2841 = vsyncadd [#allocation6 + $0x4], 4294967280 }
 0x1d6   : > { %2842 = dma.done.wait [#allocation6 + $0x5], 16 }
 0x1d7   : > { %2843 = vsyncadd [#allocation6 + $0x5], 4294967280 }
 0x1d8   : > { %2844 = dma.done.wait [#allocation6 + $0x6], 16 }
 0x1d9   : > { %2845 = vsyncadd [#allocation6 + $0x6], 4294967280 }
 0x1da   : > { %2846 = dma.done.wait [#allocation6 + $0x7], 16 }
 0x1db   : > { %2847 = vsyncadd [#allocation6 + $0x7], 4294967280  ;;  %vm1632_vm1 = vcmask 7168   ;;  %2175 = vmatprep.subr.bf16.mxu1 %v2872_v0  ;;  %1013 = vmatprep.mubr.bf16.mxu0 %v2880_v38  ;;  %v2883_v46 = vmov -1e+30   ;;  %v802_v5 = vld [vmem:[#allocation2] sm:$0xff] }
 0x1dc   : > { %1633 = vst.msk [vmem:[#allocation4] sm:$0xff] %vm1632_vm1, %v2883_v46  ;;  %1634 = vst.msk [vmem:[#allocation5] sm:$0xff] %vm1632_vm1, %v2872_v0  ;;  %2191 = vmatprep.mubr.msk.bf16.mxu1 %vm2873_vm0, %v2872_v0  ;;  %v2381_v47 = vld [vmem:[#allocation9 + $0x4] ss:$12 sps:$4 sm:$0xff]   ;;  %v2383_v48 = vld [vmem:[#allocation9] ss:$12 sps:$4 sm:$0xff]   ;;  %v803_v9 = vpack.c.bf16 %v802_v5, %v802_v5 }
 0x1dd   : > { %981 = vmatprep.subr.bf16.mxu0 %v2381_v47  ;;  %v2384_v49 = vld [vmem:[#allocation9 + $0x1c] ss:$12 sps:$4 sm:$0xff]   ;;  %v2386_v50 = vld [vmem:[#allocation9 + $0x18] ss:$12 sps:$4 sm:$0xff]   ;;  %v2387_v51 = vld [vmem:[#allocation9 + $0x34] ss:$12 sps:$4 sm:$0xff]  }
 0x1de   : > { %982 = vmatpush1.bf16.msra.mxu0 %v2383_v48  ;;  %v2389_v52 = vld [vmem:[#allocation9 + $0x30] ss:$12 sps:$4 sm:$0xff]   ;;  %v2390_v53 = vld [vmem:[#allocation9 + $0x4c] ss:$12 sps:$4 sm:$0xff]   ;;  %v2402_v54 = vld [vmem:[#allocation9 + $0x8] ss:$12 sps:$4 sm:$0xff]  }
 0x1df   : > { %983 = vmatprep.subr.bf16.mxu0 %v2384_v49  ;;  %v2392_v55 = vld [vmem:[#allocation9 + $0x48] ss:$12 sps:$4 sm:$0xff]   ;;  %v2393_v56 = vld [vmem:[#allocation9 + $0x64] ss:$12 sps:$4 sm:$0xff]   ;;  %2176 = vmatpush3.bf16.msra.mxu1 %v2402_v54  ;;  %v2406_v57 = vld [vmem:[#allocation9 + $0x20] ss:$12 sps:$4 sm:$0xff]  }
 0x1e0   : > { %2177 = vmatprep.subr.bf16.mxu1 %v2872_v0  ;;  %v2395_v58 = vld [vmem:[#allocation9 + $0x60] ss:$12 sps:$4 sm:$0xff]   ;;  %v2396_v59 = vld [vmem:[#allocation9 + $0x7c] ss:$12 sps:$4 sm:$0xff]   ;;  %v2407_v60 = vld [vmem:[#allocation9 + $0x38] ss:$12 sps:$4 sm:$0xff]  }
 0x1e1   : > { %v2398_v61 = vld [vmem:[#allocation9 + $0x78] ss:$12 sps:$4 sm:$0xff]   ;;  %v2399_v62 = vld [vmem:[#allocation9 + $0x94] ss:$12 sps:$4 sm:$0xff]   ;;  %v2408_v63 = vld [vmem:[#allocation9 + $0x50] ss:$12 sps:$4 sm:$0xff]  }
 0x1e2   : > { %984 = vmatpush1.bf16.msra.mxu0 %v2386_v50  ;;  %v2401_v1 = vld [vmem:[#allocation9 + $0x90] ss:$12 sps:$4 sm:$0xff]   ;;  %v2403_v2 = vld [vmem:[#allocation9 + $0xac] ss:$12 sps:$4 sm:$0xff]   ;;  %v2409_v3 = vld [vmem:[#allocation9 + $0x68] ss:$12 sps:$4 sm:$0xff]  }
 0x1e3   : > { %985 = vmatprep.subr.bf16.mxu0 %v2387_v51  ;;  %2178 = vmatpush3.bf16.msra.mxu1 %v2406_v57  ;;  %v2405_v4 = vld [vmem:[#allocation9 + $0xa8] ss:$12 sps:$4 sm:$0xff]   ;;  %v2410_v6 = vld [vmem:[#allocation9 + $0x80] ss:$12 sps:$4 sm:$0xff]   ;;  %v2415_v7 = vld [vmem:[#allocation11 + $0xc4] ss:$12 sps:$4 sm:$0xff]  }
 0x1e4   : > { %2179 = vmatprep.subr.bf16.mxu1 %v2872_v0  ;;  %v2413_v8 = vld [vmem:[#allocation11 + $0xc0] ss:$12 sps:$4 sm:$0xff]   ;;  %v2411_v10 = vld [vmem:[#allocation9 + $0x98] ss:$12 sps:$4 sm:$0xff]   ;;  %v2419_v11 = vld [vmem:[#allocation11 + $0xdc] ss:$12 sps:$4 sm:$0xff]  }
 0x1e5   : > { %v2417_v12 = vld [vmem:[#allocation11 + $0xd8] ss:$12 sps:$4 sm:$0xff]   ;;  %v2412_v13 = vld [vmem:[#allocation9 + $0xb0] ss:$12 sps:$4 sm:$0xff]   ;;  %v2423_v14 = vld [vmem:[#allocation11 + $0xf4] ss:$12 sps:$4 sm:$0xff]  }
 0x1e6   : > { %986 = vmatpush1.bf16.msra.mxu0 %v2389_v52  ;;  %v2421_v15 = vld [vmem:[#allocation11 + $0xf0] ss:$12 sps:$4 sm:$0xff]   ;;  %v2416_v16 = vld [vmem:[#allocation11 + $0xc8] ss:$12 sps:$4 sm:$0xff]   ;;  %v2427_v17 = vld [vmem:[#allocation11 + $0x10c] ss:$12 sps:$4 sm:$0xff]  }
 0x1e7   : > { %987 = vmatprep.subr.bf16.mxu0 %v2390_v53  ;;  %2180 = vmatpush3.bf16.msra.mxu1 %v2407_v60  ;;  %v2425_v21 = vld [vmem:[#allocation11 + $0x108] ss:$12 sps:$4 sm:$0xff]   ;;  %v2420_v24 = vld [vmem:[#allocation11 + $0xe0] ss:$12 sps:$4 sm:$0xff]   ;;  %v2424_v25 = vld [vmem:[#allocation11 + $0xf8] ss:$12 sps:$4 sm:$0xff]  }
 0x1e8   : > { %2181 = vmatprep.subr.bf16.mxu1 %v2872_v0  ;;  %v2428_v26 = vld [vmem:[#allocation11 + $0x110] ss:$12 sps:$4 sm:$0xff]   ;;  %v2429_v29 = vld [vmem:[#allocation11 + $0x120] ss:$12 sps:$4 sm:$0xff]   ;;  %v2432_v30 = vld [vmem:[#allocation11 + $0x128] ss:$12 sps:$4 sm:$0xff]  }
 0x1e9   : > { %v2431_v28 = vld [vmem:[#allocation11 + $0x124] ss:$12 sps:$4 sm:$0xff]   ;;  %v2435_v31 = vld [vmem:[#allocation11 + $0x13c] ss:$12 sps:$4 sm:$0xff]   ;;  %v2436_v33 = vld [vmem:[#allocation11 + $0x140] ss:$12 sps:$4 sm:$0xff]  }
 0x1ea   : > { %988 = vmatpush1.bf16.msra.mxu0 %v2392_v55  ;;  %v2433_v32 = vld [vmem:[#allocation11 + $0x138] ss:$12 sps:$4 sm:$0xff]   ;;  %v2439_v34 = vld [vmem:[#allocation11 + $0x154] ss:$12 sps:$4 sm:$0xff]   ;;  %v2437_v35 = vld [vmem:[#allocation11 + $0x150] ss:$12 sps:$4 sm:$0xff]  }
 0x1eb   : > { %989 = vmatprep.subr.bf16.mxu0 %v2393_v56  ;;  %2182 = vmatpush3.bf16.msra.mxu1 %v2408_v63  ;;  %v2440_v36 = vld [vmem:[#allocation11 + $0x158] ss:$12 sps:$4 sm:$0xff]   ;;  %v2441_v40 = vld [vmem:[#allocation11 + $0x168] ss:$12 sps:$4 sm:$0xff]   ;;  %v2444_v41 = vld [vmem:[#allocation11 + $0x170] ss:$12 sps:$4 sm:$0xff]  }
 0x1ec   : > { %2183 = vmatprep.subr.bf16.mxu1 %v2872_v0  ;;  %v2443_v37 = vld [vmem:[#allocation11 + $0x16c] ss:$12 sps:$4 sm:$0xff]   ;;  %v2447_v43 = vld [vmem:[#allocation9 + $0xc4] ss:$12 sps:$4 sm:$0xff]   ;;  %v2448_v47 = vld [vmem:[#allocation9 + $0xc8] ss:$12 sps:$4 sm:$0xff]  }
 0x1ed   : > { %v3326_v44 = vld [vmem:[%s3409_s2 + $0x8] sm:$0xff]  ;;  %v2449_v49 = vld [vmem:[#allocation9 + $0xd8] ss:$12 sps:$4 sm:$0xff]   ;;  %v2455_v51 = vld [vmem:[#allocation9 + $0xf4] ss:$12 sps:$4 sm:$0xff]   ;;  %s3446_s28 = sld [smem:[#allocation47_spill]] }
 0x1ee   : > { %990 = vmatpush1.bf16.msra.mxu0 %v2395_v58  ;;  %v2445_v45 = vld [vmem:[#allocation9 + $0xc0] ss:$12 sps:$4 sm:$0xff]   ;;  %v1086_v46 = vpack.c.bf16 %v3326_v44, %v3326_v44  ;;  %v2451_v48 = vld [vmem:[#allocation9 + $0xdc] ss:$12 sps:$4 sm:$0xff]   ;;  %v2456_v53 = vld [vmem:[#allocation9 + $0xf8] ss:$12 sps:$4 sm:$0xff]  }
 0x1ef   : > { %991 = vmatprep.subr.bf16.mxu0 %v2396_v59  ;;  %2184 = vmatpush3.bf16.msra.mxu1 %v2409_v3  ;;  %v2452_v50 = vld [vmem:[#allocation9 + $0xe0] ss:$12 sps:$4 sm:$0xff]   ;;  %v2453_v52 = vld [vmem:[#allocation9 + $0xf0] ss:$12 sps:$4 sm:$0xff]   ;;  %v2457_v55 = vld [vmem:[#allocation9 + $0x108] ss:$12 sps:$4 sm:$0xff]  }
 0x1f0   : > { %2185 = vmatprep.subr.bf16.mxu1 %v2872_v0  ;;  %v2459_v54 = vld [vmem:[#allocation9 + $0x10c] ss:$12 sps:$4 sm:$0xff]   ;;  %v2460_v56 = vld [vmem:[#allocation9 + $0x110] ss:$12 sps:$4 sm:$0xff]   ;;  %v2464_v58 = vld [vmem:[#allocation9 + $0x128] ss:$12 sps:$4 sm:$0xff]  }
 0x1f1   : > { %v2461_v57 = vld [vmem:[#allocation9 + $0x120] ss:$12 sps:$4 sm:$0xff]   ;;  %v2467_v59 = vld [vmem:[#allocation9 + $0x13c] ss:$12 sps:$4 sm:$0xff]   ;;  %v2465_v60 = vld [vmem:[#allocation9 + $0x138] ss:$12 sps:$4 sm:$0xff]  }
 0x1f2   : > { %992 = vmatpush1.bf16.msra.mxu0 %v2398_v61  ;;  %v2468_v61 = vld [vmem:[#allocation9 + $0x140] ss:$12 sps:$4 sm:$0xff]   ;;  %v2469_v63 = vld [vmem:[#allocation9 + $0x150] ss:$12 sps:$4 sm:$0xff]   ;;  %v2473_v3 = vld [vmem:[#allocation9 + $0x168] ss:$12 sps:$4 sm:$0xff]  }
 0x1f3   : > { %993 = vmatprep.subr.bf16.mxu0 %v2399_v62  ;;  %2186 = vmatpush3.bf16.msra.mxu1 %v2410_v6  ;;  %v2471_v62 = vld [vmem:[#allocation9 + $0x154] ss:$12 sps:$4 sm:$0xff]  }
 0x1f4   : > { %2187 = vmatprep.subr.bf16.mxu1 %v2872_v0  ;;  %v836_v5 = vld [vmem:[%s3412_s5] sm:$0x7] }
 0x1f5   : > { %v841_v6 = vrot.slane %v836_v5, %v3199_v18  ;;  %v849_v20 = vrot.slane %v836_v5, %v3293_v39 }
 0x1f6   : > { %994 = vmatpush1.bf16.msra.mxu0 %v2401_v1  ;;  %v2472_v1 = vld [vmem:[#allocation9 + $0x158] ss:$12 sps:$4 sm:$0xff]  }
 0x1f7   : > { %995 = vmatprep.subr.bf16.mxu0 %v2403_v2  ;;  %2188 = vmatpush3.bf16.msra.mxu1 %v2411_v10  ;;  %v2475_v2 = vld [vmem:[#allocation9 + $0x16c] ss:$12 sps:$4 sm:$0xff]  }
 0x1f8   : > { %2189 = vmatprep.subr.bf16.mxu1 %v2872_v0 }
 0x1fa   : > { %996 = vmatpush1.bf16.msra.mxu0 %v2405_v4  ;;  %v2476_v4 = vld [vmem:[#allocation9 + $0x170] ss:$12 sps:$4 sm:$0xff]  }
 0x1fb   : > { %1266 = vmatprep.subr.bf16.mxu0 %v2415_v7  ;;  %2190 = vmatpush3.bf16.msra.mxu1 %v2412_v13  ;;  %v845_v7 = vrot.slane %v836_v5, %v3202_v19 }
 0x1fc   : > { %2195 = vmatprep.subr.bf16.mxu1 %v2872_v0 }
 0x1fd   : > { %1014 = vmatmul.mubr.bf16.vlgmr.msra.gmra.mrb[0].mxu0 %v803_v9  ;;  %v2257_v10 = vadd.f32 %v845_v7, %v568_v23 }
 0x1fe   : > { %1267 = vmatpush1.bf16.msra.mxu0 %v2413_v8  ;;  %1298 = vmatprep.mubr.bf16.mxu0 %v2880_v38  ;;  %v2255_v8 = vadd.f32 %v841_v6, %v564_v22 }
 0x1ff   : > { %1268 = vmatprep.subr.bf16.mxu0 %v2419_v11  ;;  %2192 = vmatmul.mubr.bf16.vlgmr.msra.gmra.mrb[4].mxu1 %v803_v9 }
 0x200   : > { %2196 = vmatpush3.bf16.msra.mxu1 %v2416_v16  ;;  %2211 = vmatprep.mubr.msk.bf16.mxu1 %vm2873_vm0, %v2872_v0 }
 0x201   : > { %2197 = vmatprep.subr.bf16.mxu1 %v2872_v0 }
 0x202   : > { %1269 = vmatpush1.bf16.msra.mxu0 %v2417_v12 }
 0x203   : > { %1270 = vmatprep.subr.bf16.mxu0 %v2423_v14 }
 0x204   : > { %2198 = vmatpush3.bf16.msra.mxu1 %v2420_v24 }
 0x205   : > { %2199 = vmatprep.subr.bf16.mxu1 %v2872_v0 }
 0x206   : > { %1271 = vmatpush1.bf16.msra.mxu0 %v2421_v15 }
 0x207   : > { %1272 = vmatprep.subr.bf16.mxu0 %v2427_v17 }
 0x208   : > { %2200 = vmatpush3.bf16.msra.mxu1 %v2424_v25 }
 0x209   : > { %2201 = vmatprep.subr.bf16.mxu1 %v2872_v0 }
 0x20a   : > { %1273 = vmatpush1.bf16.msra.mxu0 %v2425_v21 }
 0x20b   : > { %1274 = vmatprep.subr.bf16.mxu0 %v2431_v28 }
 0x20c   : > { %2202 = vmatpush3.bf16.msra.mxu1 %v2428_v26 }
 0x20d   : > { %2203 = vmatprep.subr.bf16.mxu1 %v2872_v0 }
 0x20e   : > { %1275 = vmatpush1.bf16.msra.mxu0 %v2429_v29 }
 0x20f   : > { %1276 = vmatprep.subr.bf16.mxu0 %v2435_v31 }
 0x210   : > { %2204 = vmatpush3.bf16.msra.mxu1 %v2432_v30 }
 0x211   : > { %2205 = vmatprep.subr.bf16.mxu1 %v2872_v0 }
 0x212   : > { %1277 = vmatpush1.bf16.msra.mxu0 %v2433_v32 }
 0x213   : > { %1278 = vmatprep.subr.bf16.mxu0 %v2439_v34 }
 0x214   : > { %2206 = vmatpush3.bf16.msra.mxu1 %v2436_v33 }
 0x215   : > { %2207 = vmatprep.subr.bf16.mxu1 %v2872_v0 }
 0x216   : > { %1279 = vmatpush1.bf16.msra.mxu0 %v2437_v35 }
 0x217   : > { %1280 = vmatprep.subr.bf16.mxu0 %v2443_v37 }
 0x218   : > { %2208 = vmatpush3.bf16.msra.mxu1 %v2440_v36 }
 0x219   : > { %2209 = vmatprep.subr.bf16.mxu1 %v2872_v0 }
 0x21a   : > { %1281 = vmatpush1.bf16.msra.mxu0 %v2441_v40 }
 0x21b   : > { %1527 = vmatprep.subr.bf16.mxu0 %v2447_v43 }
 0x21c   : > { %2210 = vmatpush3.bf16.msra.mxu1 %v2444_v41 }
 0x21d   : > { %2215 = vmatprep.subr.bf16.mxu1 %v2872_v0  ;;  %1299 = vmatmul.mubr.bf16.vlgmr.msra.gmra.mrb[4].mxu0 %v1086_v46 }
 0x21e   : > { %1528 = vmatpush1.bf16.msra.mxu0 %v2445_v45  ;;  %1559 = vmatprep.mubr.bf16.mxu0 %v2880_v38  ;;  %v2463_v38 = vld [vmem:[#allocation9 + $0x124] ss:$12 sps:$4 sm:$0xff]  }
 0x21f   : > { %2212 = vmatmul.mubr.bf16.vlgmr.msra.gmra.mrb[8].mxu1 %v1086_v46  ;;  %1529 = vmatprep.subr.bf16.mxu0 %v2451_v48 }
 0x220   : > { %2216 = vmatpush3.bf16.msra.mxu1 %v2448_v47  ;;  %2231 = vmatprep.mubr.msk.bf16.mxu1 %vm2873_vm0, %v2872_v0  ;;  %v2037_v47 = vld [vmem:[%s3413_s6 + $0x3] sm:$0x7] }
 0x221   : > { %2217 = vmatprep.subr.bf16.mxu1 %v2872_v0  ;;  %v1126_v48 = vrot.slane %v2037_v47, %v3199_v18 }
 0x222   : > { %1530 = vmatpush1.bf16.msra.mxu0 %v2449_v49 }
 0x223   : > { %1531 = vmatprep.subr.bf16.mxu0 %v2455_v51 }
 0x224   : > { %2218 = vmatpush3.bf16.msra.mxu1 %v2452_v50  ;;  %v1130_v50 = vrot.slane %v2037_v47, %v3202_v19 }
 0x225   : > { %2219 = vmatprep.subr.bf16.mxu1 %v2872_v0 }
 0x226   : > { %1532 = vmatpush1.bf16.msra.mxu0 %v2453_v52 }
 0x227   : > { %1533 = vmatprep.subr.bf16.mxu0 %v2459_v54 }
 0x228   : > { %2220 = vmatpush3.bf16.msra.mxu1 %v2456_v53 }
 0x229   : > { %2221 = vmatprep.subr.bf16.mxu1 %v2872_v0 }
 0x22a   : > { %1534 = vmatpush1.bf16.msra.mxu0 %v2457_v55 }
 0x22b   : > { %1535 = vmatprep.subr.bf16.mxu0 %v2463_v38 }
 0x22c   : > { %2222 = vmatpush3.bf16.msra.mxu1 %v2460_v56 }
 0x22d   : > { %2223 = vmatprep.subr.bf16.mxu1 %v2872_v0 }
 0x22e   : > { %1536 = vmatpush1.bf16.msra.mxu0 %v2461_v57 }
 0x22f   : > { %1537 = vmatprep.subr.bf16.mxu0 %v2467_v59 }
 0x230   : > { %2224 = vmatpush3.bf16.msra.mxu1 %v2464_v58 }
 0x231   : > { %2225 = vmatprep.subr.bf16.mxu1 %v2872_v0 }
 0x232   : > { %1538 = vmatpush1.bf16.msra.mxu0 %v2465_v60 }
 0x233   : > { %1539 = vmatprep.subr.bf16.mxu0 %v2471_v62 }
 0x234   : > { %2226 = vmatpush3.bf16.msra.mxu1 %v2468_v61 }
 0x235   : > { %2227 = vmatprep.subr.bf16.mxu1 %v2872_v0 }
 0x236   : > { %1540 = vmatpush1.bf16.msra.mxu0 %v2469_v63 }
 0x237   : > { %1541 = vmatprep.subr.bf16.mxu0 %v2475_v2 }
 0x238   : > { %2228 = vmatpush3.bf16.msra.mxu1 %v2472_v1 }
 0x239   : > { %2229 = vmatprep.subr.bf16.mxu1 %v2872_v0 }
 0x23a   : > { %1542 = vmatpush1.bf16.msra.mxu0 %v2473_v3  ;;  %v1134_v3 = vrot.slane %v2037_v47, %v3293_v39 }
 0x23c   : > { %2230 = vmatpush3.bf16.msra.mxu1 %v2476_v4 }
 0x2d0   : > { %v1015_v9 = vpop.f32.mrb[0].mxu0 }
 0x2d1   : > { %v2256_v0 = vadd.f32 %v2255_v8, %v1015_v9  ;;  %v1017_v11 = vpop.f32.mrb[1].mxu0 }
 0x2d2   : > { %v1019_v12 = vpop.f32.mrb[2].mxu0  ;;  %v2258_v15 = vadd.f32 %v2257_v10, %v1017_v11  ;;  %v1056_v17 = vpop.f32.mrb[4].mxu1 }
 0x2d3   : > { %v2034_v13 = vmul.f32 -1.442695, %v2256_v0  ;;  %v1020_v14 = vpop.f32.mrb[3].mxu0  ;;  %v2193_v21 = vpop.f32.mrb[5].mxu1  ;;  %v1057_v29 = vadd.f32 %v1056_v17, %v849_v20 }
 0x2d4   : > { %v2035_v16 = vmul.f32 -1.442695, %v2258_v15  ;;  %v1059_v24 = vpop.f32.mrb[6].mxu1 }
 0x2d5   : > { %2477 = vpow2.f32 %v2034_v13  ;;  %v2194_v25 = vpop.f32.mrb[7].mxu1 }
 0x2d6   : > { %2479 = vpow2.f32 %v2035_v16 }
 0x2df   : > { %v2478_v26 = vpop.eup %2477 }
 0x2e0   : > { %v1066_v22 = vadd.f32 1.0, %v2478_v26  ;;  %v2480_v28 = vpop.eup %2479 }
 0x2e1   : > { %v1073_v23 = vadd.f32 1.0, %v2480_v28 }
 0x2e2   : > { %2481 = vrcp.f32 %v1066_v22 }
 0x2e3   : > { %2483 = vrcp.f32 %v1073_v23 }
 0x2ec   : > { %v2482_v30 = vpop.eup %2481 }
 0x2ed   : > { %v1076_v31 = vmul.f32 %v2482_v30, %v3297_v42  ;;  %v2484_v33 = vpop.eup %2483 }
 0x2ee   : > { %v1079_v34 = vsub.f32 1.0, %v2484_v33  ;;  %v1081_v37 = vmul.f32 %v2484_v33, %v3246_v27  ;;  %v2062_v27 = vld [vmem:[%s3412_s5 + $0x3] sm:$0x7] }
 0x2ef   : > { %v1077_v32 = vadd.f32 %v1076_v31, %v1057_v29  ;;  %v1387_v49 = vrot.slane %v2062_v27, %v3199_v18  ;;  %v1391_v51 = vrot.slane %v2062_v27, %v3202_v19  ;;  %v1395_v4 = vrot.slane %v2062_v27, %v3293_v39 }
 0x2f1   : > { %2485 = vtanh.f32 %v1077_v32  ;;  %v2259_v52 = vadd.f32 %v1387_v49, %v1126_v48  ;;  %v2261_v55 = vadd.f32 %v1391_v51, %v1130_v50 }
 0x2f2   : > { %v1341_v43 = vpop.f32.mrb[8].mxu1 }
 0x2f3   : > { %v2213_v45 = vpop.f32.mrb[9].mxu1  ;;  %v1342_v6 = vadd.f32 %v1341_v43, %v1134_v3 }
 0x2f4   : > { %v1344_v46 = vpop.f32.mrb[10].mxu1 }
 0x2f5   : > { %v2214_v42 = vpop.f32.mrb[11].mxu1 }
 0x2fb   : > { %v2486_v35 = vpop.eup %2485 }
 0x2fc   : > { %v1080_v36 = vmul.f32 %v2486_v35, %v1079_v34 }
 0x2fe   : > { %v1082_v40 = vadd.f32 %v1081_v37, %v1080_v36 }
 0x300   : > { %1083 = vst [vmem:[%s3446_s28] sm:$0xff] %v1082_v40  ;;  %v1347_v41 = vpack.c.bf16 %v1082_v40, %v1082_v40 }
 0x302   : > { %1560 = vmatmul.mubr.bf16.vlgmr.msra.gmra.mrb[4].mxu0 %v1347_v41  ;;  %2232 = vmatmul.mubr.bf16.vlgmr.msra.gmra.mrb[12].mxu1 %v1347_v41 }
 0x3d5   : > { %v1561_v53 = vpop.f32.mrb[4].mxu0  ;;  %v1602_v54 = vpop.f32.mrb[12].mxu1 }
 0x3d6   : > { %v2260_v56 = vadd.f32 %v2259_v52, %v1561_v53  ;;  %v1563_v38 = vpop.f32.mrb[5].mxu0  ;;  %v2233_v57 = vpop.f32.mrb[13].mxu1  ;;  %v1603_v8 = vadd.f32 %v1602_v54, %v1395_v4 }
 0x3d7   : > { %v1565_v58 = vpop.f32.mrb[6].mxu0  ;;  %v1605_v59 = vpop.f32.mrb[14].mxu1  ;;  %v2262_v63 = vadd.f32 %v2261_v55, %v1563_v38 }
 0x3d8   : > { %v2087_v60 = vmul.f32 -1.442695, %v2260_v56  ;;  %v1566_v61 = vpop.f32.mrb[7].mxu0  ;;  %v2234_v62 = vpop.f32.mrb[15].mxu1 }
 0x3d9   : > { %v2088_v1 = vmul.f32 -1.442695, %v2262_v63 }
 0x3da   : > { %2487 = vpow2.f32 %v2087_v60 }
 0x3db   : > { %2489 = vpow2.f32 %v2088_v1 }
 0x3e4   : > { %v2488_v18 = vpop.eup %2487 }
 0x3e5   : > { %v1612_v2 = vadd.f32 1.0, %v2488_v18  ;;  %v2490_v19 = vpop.eup %2489 }
 0x3e6   : > { %v1619_v5 = vadd.f32 1.0, %v2490_v19 }
 0x3e7   : > { %2491 = vrcp.f32 %v1612_v2 }
 0x3e8   : > { %2493 = vrcp.f32 %v1619_v5 }
 0x3f1   : > { %v2492_v7 = vpop.eup %2491 }
 0x3f2   : > { %v1622_v9 = vmul.f32 %v2492_v7, %v1342_v6  ;;  %v2494_v0 = vpop.eup %2493 }
 0x3f3   : > { %v1625_v11 = vsub.f32 1.0, %v2494_v0  ;;  %v1627_v14 = vmul.f32 %v2494_v0, %v3326_v44 }
 0x3f4   : > { %v1623_v10 = vadd.f32 %v1622_v9, %v1603_v8 }
 0x3f6   : > { %2495 = vtanh.f32 %v1623_v10 }
 0x400   : > { %v2496_v12 = vpop.eup %2495 }
 0x401   : > { %v1626_v13 = vmul.f32 %v2496_v12, %v1625_v11 }
 0x403   : > { %v1628_v15 = vadd.f32 %v1627_v14, %v1626_v13 }
 0x405   : > { %2089 = vst [vmem:[%s3446_s28 + $0x8] sm:$0xff] %v1628_v15  ;;  %1631 = vst [vmem:[#allocation3] sm:$0xff] %v1628_v15 }
 0x406 PF: > { %v2498_v39 = vld [vmem:[%s3116_s30] sm:$0xff]   ;;  %v2884_v16 = vmov 0.0   ;;  %v2499_v17 = vld [vmem:[%s3116_s30 + $0x8] sm:$0xff]   ;;  %vm2885_vm2 = vmmov 0   ;;  %v2500_v44 = vld [vmem:[%s3116_s30 + $0x10] sm:$0xff]   ;;  %s3447_s10 = scalar_lea.vmem %s3415_s8, %s3124_s15  ;;  %v2886_v34 = vmov 0  }
 0x407   : > { %2235 = vmatprep.subr.bf16.mxu0 %v2884_v16  ;;  %2251 = vmatprep.mubr.msk.bf16.mxu0 %vm2885_vm2, %v2884_v16  ;;  %v2501_v21 = vld [vmem:[%s3116_s30 + $0x18] sm:$0xff]   ;;  %v2502_v24 = vld [vmem:[%s3116_s30 + $0x20] sm:$0xff]   ;;  %v2503_v25 = vld [vmem:[%s3116_s30 + $0x28] sm:$0xff]   ;;  %vm1769_vm3 = vcmask 7168   ;;  %p2099_p9 = scmp.ne.s32.totalorder %s2969_s25, 2 }
 0x408   : > { %2236 = vmatpush3.bf16.msra.mxu0 %v2498_v39  ;;  %v2504_v26 = vld [vmem:[%s3116_s30 + $0x30] sm:$0xff]   ;;  %v2505_v22 = vld [vmem:[%s3116_s30 + $0x38] sm:$0xff]   ;;  %v2090_v23 = vld [vmem:[%s3447_s10] ss:$0 sm:$0xff]  ;;  %2497 = vset.pattern.permute.xlu0 %v2886_v34 }
 0x409   : > { %2237 = vmatprep.subr.bf16.mxu0 %v2884_v16  ;;  %v1749_v35 = vld [vmem:[#allocation4] sm:$0xff]  ;;  %v1753_v27 = vld [vmem:[#allocation5] sm:$0xff] }
 0x40c   : > { %2238 = vmatpush3.bf16.msra.mxu0 %v2499_v17  ;;  %v1635_v28 = vld [vmem:[#allocation3] sm:$0xff] }
 0x40d   : > { %2239 = vmatprep.subr.bf16.mxu0 %v2884_v16  ;;  %v1636_v20 = vpack.c.bf16 %v1635_v28, %v1635_v28 }
 0x410   : > { %2240 = vmatpush3.bf16.msra.mxu0 %v2500_v44 }
 0x411   : > { %2241 = vmatprep.subr.bf16.mxu0 %v2884_v16 }
 0x414   : > { %2242 = vmatpush3.bf16.msra.mxu0 %v2501_v21 }
 0x415   : > { %2243 = vmatprep.subr.bf16.mxu0 %v2884_v16 }
 0x418   : > { %2244 = vmatpush3.bf16.msra.mxu0 %v2502_v24 }
 0x419   : > { %2245 = vmatprep.subr.bf16.mxu0 %v2884_v16 }
 0x41c   : > { %2246 = vmatpush3.bf16.msra.mxu0 %v2503_v25 }
 0x41d   : > { %2247 = vmatprep.subr.bf16.mxu0 %v2884_v16 }
 0x420   : > { %2248 = vmatpush3.bf16.msra.mxu0 %v2504_v26 }
 0x421   : > { %2249 = vmatprep.subr.bf16.mxu0 %v2884_v16 }
 0x424   : > { %2250 = vmatpush3.bf16.msra.mxu0 %v2505_v22 }
 0x427   : > { %2252 = vmatmul.mubr.bf16.vlgmr.msra.gmra.mrb[0].mxu0 %v1636_v20 }
 0x4fa   : > { %v1742_v29 = vpop.f32.mrb[0].mxu0 }
 0x4fb   : > { %v1743_v30 = vadd.f32 %v2090_v23, %v1742_v29  ;;  %v2253_v31 = vpop.f32.mrb[1].mxu0 }
 0x4fc   : > { %v1745_v32 = vpop.f32.mrb[2].mxu0 }
 0x4fd   : > { %1748 = vst [vmem:[%s3134_s24] sm:$0xff] %v1743_v30  ;;  %1750 = vmax.xlane.f32.xlu0 %v1743_v30  ;;  %v2254_v33 = vpop.f32.mrb[3].mxu0  ;;  %s3448_s24 = sld [smem:[#allocation48_spill]] (!%p2099_p9) }
 0x58a   : > { %v1751_v36 = vpop.xlane.xlu0 %1750 }
 0x58b   : > { %v1752_v37 = vmax.f32 %v1749_v35, %v1751_v36 }
 0x58d   : > { %v1754_v40 = vsub.f32 %v1749_v35, %v1752_v37  ;;  %1771 = vst.msk [vmem:[#allocation4] sm:$0xff] %vm1769_vm3, %v1752_v37  ;;  %1760 = vperm.xlu0 %2497, %v1752_v37  }
 0x58f   : > { %v1755_v42 = vmul.f32 1.442695, %v1754_v40 }
 0x594   : > { %v1776_v53 = vld [vmem:[#allocation4] sm:$0xff] (!%p2099_p9) }
 0x60c   : > { %v1761_v41 = vpop.permute.xlu0 %1760 }
 0x60d   : > { %v1763_v43 = vsub.f32 %v1743_v30, %v1761_v41 }
 0x60f   : > { %v1764_v45 = vmul.f32 1.442695, %v1763_v43 }
 0x611   : > { %2506 = vpow2.f32 %v1764_v45 }
 0x612   : > { %2508 = vpow2.f32 %v1755_v42 }
 0x61b   : > { %v2507_v46 = vpop.eup %2506 }
 0x61c   : > { %1766 = vadd.xlane.f32.xlu1 %v2507_v46  ;;  %v2509_v47 = vpop.eup %2508 }
 0x61d   : > { %v1757_v48 = vmul.f32 %v2509_v47, %v1753_v27 }
 0x6a6   : > { %1775 = sbr.rel (%p2099_p9) target bundleno = 1732 (0x6c4), region = 100 }
 0x6a9   : > { %v1767_v49 = vpop.xlane.xlu1 %1766 }
 0x6aa   : > { %v1768_v50 = vadd.f32 %v1767_v49, %v1757_v48 }
 0x6ac   : > { %1770 = vst.msk [vmem:[#allocation5] sm:$0xff] %vm1769_vm3, %v1768_v50 }
 0x6b3   : > { %v1777_v51 = vld [vmem:[#allocation5] sm:$0xff] }
 0x6b4   : > { %2510 = vlog2.f32 %v1777_v51 }
 0x6be   : > { %v2511_v52 = vpop.eup %2510 }
 0x6bf   : > { %v1779_v54 = vmul.f32 0.6931472, %v2511_v52 }
 0x6c1   : > { %v1780_v55 = vadd.f32 %v1779_v54, %v1776_v53 }
 0x6c3   : > { %1781 = vst.msk [vmem:[%s3448_s24] sm:$0xff] %vm1769_vm3, %v1780_v55 }
 0x6c4 PF: > { %s3449_s24 = sld [smem:[#allocation44_spill]]  ;;  %s3450_s21 = sld [smem:[#allocation45_spill]] }
 0x6c5   : > { %s3451_s22 = smov %s2854_s23  ;;  %s3452_s23 = smov %s2858_s0 }
 0x6ca   : > { %p27_p12 = scmp.ge.s32.totalorder %s3449_s24, 5   ;;  %s3453_s0 = smov %s3450_s21 }
 0x6cc   :  { %29 = sbr.rel (!%p27_p12) target bundleno = 19 (0x13), region = 189 }
 0x6d3   :  { %1813 = vsyncpa [#allocation10], 1 }
 0x6d4   :  { %1815 = vsyncpa [#allocation10 + $0x1], 1 }
 0x6d5   :  { %1816 = vsyncpa [#allocation12], 1 }
 0x6d6   :  { %1817 = vsyncmov [#allocation6] }
 0x6d9   :  { %s1818_s25 = vpop.sfrf %1817 }
 0x6da   :  { %p2102_p2 = scmp.ne.s32.totalorder %s1818_s25, 0 }
 0x6dc   :  { %1822 = shalt.err (%p2102_p2)  }
 0x6dd   :  { %1824 = vsyncmov [#allocation6 + $0x1] }
 0x6e0   :  { %s1825_s17 = vpop.sfrf %1824 }
 0x6e1   :  { %p2103_p4 = scmp.ne.s32.totalorder %s1825_s17, 0 }
 0x6e3   :  { %1829 = shalt.err (%p2103_p4)  }
 0x6e4   :  { %1831 = vsyncmov [#allocation6 + $0x2] }
 0x6e7   :  { %s1832_s13 = vpop.sfrf %1831 }
 0x6e8   :  { %p2104_p3 = scmp.ne.s32.totalorder %s1832_s13, 0 }
 0x6ea   :  { %1836 = shalt.err (%p2104_p3)  }
 0x6eb   :  { %1838 = vsyncmov [#allocation6 + $0x3] }
 0x6ee   :  { %s1839_s14 = vpop.sfrf %1838 }
 0x6ef   :  { %p2105_p13 = scmp.ne.s32.totalorder %s1839_s14, 0 }
 0x6f1   :  { %1843 = shalt.err (%p2105_p13)  }
 0x6f2   :  { %1845 = vsyncmov [#allocation6 + $0x4] }
 0x6f5   :  { %s1846_s1 = vpop.sfrf %1845 }
 0x6f6   :  { %p2106_p1 = scmp.ne.s32.totalorder %s1846_s1, 0 }
 0x6f8   :  { %1850 = shalt.err (%p2106_p1)  }
 0x6f9   :  { %1852 = vsyncmov [#allocation6 + $0x5] }
 0x6fc   :  { %s1853_s2 = vpop.sfrf %1852 }
 0x6fd   :  { %p2107_p5 = scmp.ne.s32.totalorder %s1853_s2, 0 }
 0x6ff   :  { %1857 = shalt.err (%p2107_p5)  }
 0x700   :  { %1859 = vsyncmov [#allocation6 + $0x6] }
 0x703   :  { %s1860_s4 = vpop.sfrf %1859 }
 0x704   :  { %p2108_p10 = scmp.ne.s32.totalorder %s1860_s4, 0 }
 0x706   :  { %1864 = shalt.err (%p2108_p10)  }
 0x707   :  { %1866 = vsyncmov [#allocation6 + $0x7] }
 0x70a   :  { %s1867_s5 = vpop.sfrf %1866 }
 0x70b   :  { %p2109_p0 = scmp.ne.s32.totalorder %s1867_s5, 0 }
 0x70d   :  { %1871 = shalt.err (%p2109_p0)  }

</bundles_post_ra>
